<compile_context>
chip_gen: v6e
topology: v6e:2x2x1
jax: 0.10.0
libtpu: 0.0.40
codegen_flags: <defaults>
</compile_context>

<pallas_src>
import jax
import jax.numpy as jnp
from jax.experimental import pallas as pl
from jax.experimental.pallas import tpu as pltpu

EPS = 1e-5


# ---------------------------------------------------------------------------
# Kernel 1: 3x3 conv (stride 1, pad 1) on one output row + BN stat accumulation
# ---------------------------------------------------------------------------
def conv3x3_stats_kernel(r0_ref, r1_ref, r2_ref, w_ref, y_ref, s_ref, sq_ref):
    """One output image row of a 3x3 conv, plus per-channel sum / sum-of-squares.

    r0/r1/r2: (1, 1, W+2, Cin)  three consecutive rows of the padded input (halo)
    w_ref:    (3, 3, Cin, Cout) conv taps, (dy, dx, cin, cout)
    y_ref:    (1, 1, W, Cout)   raw (pre-BN) conv output row
    s_ref:    (1, Cout)         running per-channel sum     (revisited output)
    sq_ref:   (1, Cout)         running per-channel sum(x^2) (revisited output)
    """
    # Initialize the stat accumulators on the very first grid step.
    @pl.when(jnp.logical_and(pl.program_id(0) == 0, pl.program_id(1) == 0))
    def _():
        s_ref[...] = jnp.zeros_like(s_ref)
        sq_ref[...] = jnp.zeros_like(sq_ref)

    wo = y_ref.shape[2]
    cout = y_ref.shape[3]

    # 9 taps accumulated into a single f32 accumulator (no bias: BN absorbs it).
    acc = jnp.zeros((wo, cout), jnp.float32)
    rows = (r0_ref, r1_ref, r2_ref)
    for dy in range(3):
        r = rows[dy][0, 0]                     # (W+2, Cin)
        for dx in range(3):
            acc = acc + jnp.dot(r[dx:dx + wo, :], w_ref[dy, dx],
                                preferred_element_type=jnp.float32)

    y_ref[...] = acc[None, None]

    # BN statistics via ones-row MXU matmuls (keeps the XLU/VPU free).
    ones_row = jnp.ones((1, wo), jnp.float32)
    s_ref[...] = s_ref[...] + jnp.dot(ones_row, acc,
                                      preferred_element_type=jnp.float32)
    sq_ref[...] = sq_ref[...] + jnp.dot(ones_row, acc * acc,
                                        preferred_element_type=jnp.float32)


def conv3x3_bn_stats(x_pad, w_taps):
    """x_pad: (N, H+2, W+2, Cin) zero-padded NHWC.  w_taps: (3, 3, Cin, Cout)."""
    N, Hp, Wp, Cin = x_pad.shape
    H, W = Hp - 2, Wp - 2
    Cout = w_taps.shape[-1]
    return pl.pallas_call(
        conv3x3_stats_kernel,
        out_shape=(
            jax.ShapeDtypeStruct((N, H, W, Cout), jnp.float32),
            jax.ShapeDtypeStruct((1, Cout), jnp.float32),
            jax.ShapeDtypeStruct((1, Cout), jnp.float32),
        ),
        grid=(N, H),
        in_specs=[
            pl.BlockSpec((1, 1, Wp, Cin), lambda n, h: (n, h, 0, 0)),
            pl.BlockSpec((1, 1, Wp, Cin), lambda n, h: (n, h + 1, 0, 0)),
            pl.BlockSpec((1, 1, Wp, Cin), lambda n, h: (n, h + 2, 0, 0)),
            pl.BlockSpec((3, 3, Cin, Cout), lambda n, h: (0, 0, 0, 0)),
        ],
        out_specs=[
            pl.BlockSpec((1, 1, W, Cout), lambda n, h: (n, h, 0, 0)),
            pl.BlockSpec((1, Cout), lambda n, h: (0, 0)),
            pl.BlockSpec((1, Cout), lambda n, h: (0, 0)),
        ],
        compiler_params=pltpu.CompilerParams(
            dimension_semantics=("arbitrary", "arbitrary")),
    )(x_pad, x_pad, x_pad, w_taps)


# ---------------------------------------------------------------------------
# Kernel 2/3: folded BN affine (single FMA) + ReLU, or + residual add
# ---------------------------------------------------------------------------
def affine_relu_kernel(y_ref, scale_ref, shift_ref, out_ref):
    out_ref[...] = jnp.maximum(y_ref[...] * scale_ref[...] + shift_ref[...], 0.0)


def affine_residual_kernel(y_ref, x_ref, scale_ref, shift_ref, out_ref):
    out_ref[...] = y_ref[...] * scale_ref[...] + shift_ref[...] + x_ref[...]


def _row_tile(m):
    for t in (512, 256, 128, 64, 32, 16, 8):
        if m % t == 0 and m // t >= 2:
            return t
    return m


def affine_relu(y_flat, scale, shift):
    M, C = y_flat.shape
    TM = _row_tile(M)
    return pl.pallas_call(
        affine_relu_kernel,
        out_shape=jax.ShapeDtypeStruct((M, C), jnp.float32),
        grid=(M // TM,),
        in_specs=[
            pl.BlockSpec((TM, C), lambda i: (i, 0)),
            pl.BlockSpec((1, C), lambda i: (0, 0)),
            pl.BlockSpec((1, C), lambda i: (0, 0)),
        ],
        out_specs=pl.BlockSpec((TM, C), lambda i: (i, 0)),
        compiler_params=pltpu.CompilerParams(
            dimension_semantics=("parallel",)),
    )(y_flat, scale, shift)


def affine_residual(y_flat, x_flat, scale, shift):
    M, C = y_flat.shape
    TM = _row_tile(M)
    return pl.pallas_call(
        affine_residual_kernel,
        out_shape=jax.ShapeDtypeStruct((M, C), jnp.float32),
        grid=(M // TM,),
        in_specs=[
            pl.BlockSpec((TM, C), lambda i: (i, 0)),
            pl.BlockSpec((TM, C), lambda i: (i, 0)),
            pl.BlockSpec((1, C), lambda i: (0, 0)),
            pl.BlockSpec((1, C), lambda i: (0, 0)),
        ],
        out_specs=pl.BlockSpec((TM, C), lambda i: (i, 0)),
        compiler_params=pltpu.CompilerParams(
            dimension_semantics=("parallel",)),
    )(y_flat, x_flat, scale, shift)


# ---------------------------------------------------------------------------
# Host-side (tiny) BN fold: mean/var -> (scale, shift) so the per-element
# epilogue is a single FMA.
# ---------------------------------------------------------------------------
def bn_scale_shift(s, sq, gamma, beta, count):
    mean = s / count
    var = sq / count - mean * mean          # biased variance (PyTorch training BN)
    inv = jax.lax.rsqrt(var + EPS)
    scale = gamma.reshape(1, -1) * inv
    shift = beta.reshape(1, -1) - mean * scale
    return scale, shift


# ---------------------------------------------------------------------------
# Full forward pass matching the PyTorch module (training-mode BatchNorm)
# ---------------------------------------------------------------------------
def residual_block_forward(x_nchw, w1, b1, g1, be1, w2, b2, g2, be2):
    # Conv biases are mathematically a no-op under training-mode BN; drop them.
    del b1, b2
    N, C, H, W = x_nchw.shape
    M = N * H * W
    cnt = jnp.float32(M)                    # GLOBAL element count per channel

    x_nhwc = jnp.transpose(x_nchw, (0, 2, 3, 1))
    x_pad = jnp.pad(x_nhwc, ((0, 0), (1, 1), (1, 1), (0, 0)))
    w1_taps = jnp.transpose(w1, (2, 3, 1, 0))       # (3, 3, Cin, Cout)
    w2_taps = jnp.transpose(w2, (2, 3, 1, 0))

    # conv1 + BN1 stats
    y1_raw, s1, sq1 = conv3x3_bn_stats(x_pad, w1_taps)
    scale1, shift1 = bn_scale_shift(s1, sq1, g1, be1, cnt)
    # BN1 affine + ReLU (single FMA + max), row-tiled
    y1 = affine_relu(y1_raw.reshape(M, C), scale1, shift1)
    y1_pad = jnp.pad(y1.reshape(N, H, W, C), ((0, 0), (1, 1), (1, 1), (0, 0)))

    # conv2 + BN2 stats
    y2_raw, s2, sq2 = conv3x3_bn_stats(y1_pad, w2_taps)
    scale2, shift2 = bn_scale_shift(s2, sq2, g2, be2, cnt)
    # BN2 affine + residual add
    out = affine_residual(y2_raw.reshape(M, C), x_nhwc.reshape(M, C),
                          scale2, shift2)
    return jnp.transpose(out.reshape(N, H, W, C), (0, 3, 1, 2))


# ---------------------------------------------------------------------------
# Pure-JAX reference (keeps the conv biases; training-mode BN, biased variance)
# ---------------------------------------------------------------------------
def reference_forward(x, w1, b1, g1, be1, w2, b2, g2, be2):
    def conv(z, w, b):
        y = jax.lax.conv_general_dilated(
            z, w, window_strides=(1, 1), padding="SAME",
            dimension_numbers=("NCHW", "OIHW", "NCHW"))
        return y + b[None, :, None, None]

    def bn(y, g, be):
        mean = y.mean(axis=(0, 2, 3), keepdims=True)
        var = y.var(axis=(0, 2, 3), keepdims=True)
        return ((y - mean) / jnp.sqrt(var + EPS)
                * g[None, :, None, None] + be[None, :, None, None])

    y = jnp.maximum(bn(conv(x, w1, b1), g1, be1), 0.0)
    return bn(conv(y, w2, b2), g2, be2) + x


if __name__ == "__main__":
    # Module defaults: in_channels=64, n=64, k=3, s=1 (residual requires n == C).
    N, C, H, W = 2, 64, 16, 16

    key = jax.random.PRNGKey(0)
    ks = jax.random.split(key, 9)
    x = jax.random.normal(ks[0], (N, C, H, W), dtype=jnp.float32)
    w1 = 0.1 * jax.random.normal(ks[1], (C, C, 3, 3), dtype=jnp.float32)
    b1 = 0.1 * jax.random.normal(ks[2], (C,), dtype=jnp.float32)
    w2 = 0.1 * jax.random.normal(ks[3], (C, C, 3, 3), dtype=jnp.float32)
    b2 = 0.1 * jax.random.normal(ks[4], (C,), dtype=jnp.float32)
    g1 = 1.0 + 0.1 * jax.random.normal(ks[5], (C,), dtype=jnp.float32)
    be1 = 0.1 * jax.random.normal(ks[6], (C,), dtype=jnp.float32)
    g2 = 1.0 + 0.1 * jax.random.normal(ks[7], (C,), dtype=jnp.float32)
    be2 = 0.1 * jax.random.normal(ks[8], (C,), dtype=jnp.float32)

    fwd = jax.jit(residual_block_forward)
    out = jax.block_until_ready(fwd(x, w1, b1, g1, be1, w2, b2, g2, be2))

    ref = reference_forward(x, w1, b1, g1, be1, w2, b2, g2, be2)
    assert out.shape == (N, C, H, W), out.shape
    max_err = float(jnp.max(jnp.abs(out - ref)))
    assert jnp.allclose(out, ref, atol=2e-3, rtol=2e-3), max_err

    print("KERNEL_OK")
</pallas_src>

<mosaic_0001>
module attributes {stable_mosaic.version = 11 : i64} {
  func.func @conv3x3_stats_kernel(%arg0: i32, %arg1: i32, %arg2: memref<1x1x18x64xf32, #tpu.memory_space<vmem>>, %arg3: memref<1x1x18x64xf32, #tpu.memory_space<vmem>>, %arg4: memref<1x1x18x64xf32, #tpu.memory_space<vmem>>, %arg5: memref<3x3x64x64xf32, #tpu.memory_space<vmem>>, %arg6: memref<1x1x16x64xf32, #tpu.memory_space<vmem>>, %arg7: memref<1x64xf32, #tpu.memory_space<vmem>>, %arg8: memref<1x64xf32, #tpu.memory_space<vmem>>) attributes {dimension_semantics = [#tpu.dimension_semantics<arbitrary>, #tpu.dimension_semantics<arbitrary>], iteration_bounds = array<i64: 2, 16>, scalar_prefetch = 0 : i64, scratch_operands = 0 : i64, tpu.core_type = #tpu.core_type<tc>, window_params = [{transform_indices = @transform_0, window_bounds = array<i64: 1, 1, 18, 64>}, {transform_indices = @transform_1, window_bounds = array<i64: 1, 1, 18, 64>}, {transform_indices = @transform_2, window_bounds = array<i64: 1, 1, 18, 64>}, {pipeline_mode = #tpu.pipeline_mode<synchronous>, transform_indices = @transform_3, window_bounds = array<i64: 3, 3, 64, 64>}, {transform_indices = @transform_4, window_bounds = array<i64: 1, 1, 16, 64>}, {pipeline_mode = #tpu.pipeline_mode<synchronous>, transform_indices = @transform_5, window_bounds = array<i64: 1, 64>}, {pipeline_mode = #tpu.pipeline_mode<synchronous>, transform_indices = @transform_6, window_bounds = array<i64: 1, 64>}]} {
    %c0_i32 = arith.constant 0 : i32
    %0 = arith.cmpi eq, %arg0, %c0_i32 : i32
    %c0_i32_0 = arith.constant 0 : i32
    %1 = arith.cmpi eq, %arg1, %c0_i32_0 : i32
    %2 = arith.andi %0, %1 : i1
    %3 = arith.extui %2 : i1 to i32
    %c0_i32_1 = arith.constant 0 : i32
    %4 = arith.cmpi ne, %3, %c0_i32_1 : i32
    scf.if %4 {
      %cst_71 = arith.constant 0.000000e+00 : f32
      %69 = vector.broadcast %cst_71 : f32 to vector<1x64xf32>
      %c0_72 = arith.constant 0 : index
      %c0_73 = arith.constant 0 : index
      %70 = vector.load %arg7[%c0_72, %c0_73] : memref<1x64xf32, #tpu.memory_space<vmem>>, vector<1x64xf32>
      tpu.vector_store %arg7[%c0_72, %c0_73], %69 {strides = array<i32>} : memref<1x64xf32, #tpu.memory_space<vmem>>, vector<1x64xf32>,
      %cst_74 = arith.constant 0.000000e+00 : f32
      %71 = vector.broadcast %cst_74 : f32 to vector<1x64xf32>
      %c0_75 = arith.constant 0 : index
      %c0_76 = arith.constant 0 : index
      %72 = vector.load %arg8[%c0_75, %c0_76] : memref<1x64xf32, #tpu.memory_space<vmem>>, vector<1x64xf32>
      tpu.vector_store %arg8[%c0_75, %c0_76], %71 {strides = array<i32>} : memref<1x64xf32, #tpu.memory_space<vmem>>, vector<1x64xf32>,
    } else {
    }
    %cst = arith.constant 0.000000e+00 : f32
    %5 = vector.broadcast %cst : f32 to vector<16x64xf32>
    %c0 = arith.constant 0 : index
    %c0_2 = arith.constant 0 : index
    %c0_3 = arith.constant 0 : index
    %c0_4 = arith.constant 0 : index
    %6 = vector.load %arg2[%c0, %c0_2, %c0_3, %c0_4] : memref<1x1x18x64xf32, #tpu.memory_space<vmem>>, vector<1x1x18x64xf32>
    %7 = vector.shape_cast %6 : vector<1x1x18x64xf32> to vector<18x64xf32>
    %8 = vector.extract_strided_slice %7 {offsets = [0, 0], sizes = [16, 64], strides = [1, 1]} : vector<18x64xf32> to vector<16x64xf32>
    %c0_5 = arith.constant 0 : index
    %c0_6 = arith.constant 0 : index
    %c0_7 = arith.constant 0 : index
    %c0_8 = arith.constant 0 : index
    %9 = vector.load %arg5[%c0_5, %c0_6, %c0_7, %c0_8] : memref<3x3x64x64xf32, #tpu.memory_space<vmem>>, vector<1x1x64x64xf32>
    %10 = vector.shape_cast %9 : vector<1x1x64x64xf32> to vector<64x64xf32>
    %cst_9 = arith.constant dense<0.000000e+00> : vector<16x64xf32>
    %11 = tpu.matmul %8, %10, %cst_9 {dimension_numbers = #tpu.dot_dimension_numbers<[1], [0], [0], [1], [0, 0, 1, 1], [], []>} : vector<16x64xf32>, vector<64x64xf32>, vector<16x64xf32> -> vector<16x64xf32>
    %12 = arith.addf %5, %11 : vector<16x64xf32>
    %13 = vector.extract_strided_slice %7 {offsets = [1, 0], sizes = [16, 64], strides = [1, 1]} : vector<18x64xf32> to vector<16x64xf32>
    %c0_10 = arith.constant 0 : index
    %c1 = arith.constant 1 : index
    %c0_11 = arith.constant 0 : index
    %c0_12 = arith.constant 0 : index
    %14 = vector.load %arg5[%c0_10, %c1, %c0_11, %c0_12] : memref<3x3x64x64xf32, #tpu.memory_space<vmem>>, vector<1x1x64x64xf32>
    %15 = vector.shape_cast %14 : vector<1x1x64x64xf32> to vector<64x64xf32>
    %cst_13 = arith.constant dense<0.000000e+00> : vector<16x64xf32>
    %16 = tpu.matmul %13, %15, %cst_13 {dimension_numbers = #tpu.dot_dimension_numbers<[1], [0], [0], [1], [0, 0, 1, 1], [], []>} : vector<16x64xf32>, vector<64x64xf32>, vector<16x64xf32> -> vector<16x64xf32>
    %17 = arith.addf %12, %16 : vector<16x64xf32>
    %18 = vector.extract_strided_slice %7 {offsets = [2, 0], sizes = [16, 64], strides = [1, 1]} : vector<18x64xf32> to vector<16x64xf32>
    %c0_14 = arith.constant 0 : index
    %c2 = arith.constant 2 : index
    %c0_15 = arith.constant 0 : index
    %c0_16 = arith.constant 0 : index
    %19 = vector.load %arg5[%c0_14, %c2, %c0_15, %c0_16] : memref<3x3x64x64xf32, #tpu.memory_space<vmem>>, vector<1x1x64x64xf32>
    %20 = vector.shape_cast %19 : vector<1x1x64x64xf32> to vector<64x64xf32>
    %cst_17 = arith.constant dense<0.000000e+00> : vector<16x64xf32>
    %21 = tpu.matmul %18, %20, %cst_17 {dimension_numbers = #tpu.dot_dimension_numbers<[1], [0], [0], [1], [0, 0, 1, 1], [], []>} : vector<16x64xf32>, vector<64x64xf32>, vector<16x64xf32> -> vector<16x64xf32>
    %22 = arith.addf %17, %21 : vector<16x64xf32>
    %c0_18 = arith.constant 0 : index
    %c0_19 = arith.constant 0 : index
    %c0_20 = arith.constant 0 : index
    %c0_21 = arith.constant 0 : index
    %23 = vector.load %arg3[%c0_18, %c0_19, %c0_20, %c0_21] : memref<1x1x18x64xf32, #tpu.memory_space<vmem>>, vector<1x1x18x64xf32>
    %24 = vector.shape_cast %23 : vector<1x1x18x64xf32> to vector<18x64xf32>
    %25 = vector.extract_strided_slice %24 {offsets = [0, 0], sizes = [16, 64], strides = [1, 1]} : vector<18x64xf32> to vector<16x64xf32>
    %c1_22 = arith.constant 1 : index
    %c0_23 = arith.constant 0 : index
    %c0_24 = arith.constant 0 : index
    %c0_25 = arith.constant 0 : index
    %26 = vector.load %arg5[%c1_22, %c0_23, %c0_24, %c0_25] : memref<3x3x64x64xf32, #tpu.memory_space<vmem>>, vector<1x1x64x64xf32>
    %27 = vector.shape_cast %26 : vector<1x1x64x64xf32> to vector<64x64xf32>
    %cst_26 = arith.constant dense<0.000000e+00> : vector<16x64xf32>
    %28 = tpu.matmul %25, %27, %cst_26 {dimension_numbers = #tpu.dot_dimension_numbers<[1], [0], [0], [1], [0, 0, 1, 1], [], []>} : vector<16x64xf32>, vector<64x64xf32>, vector<16x64xf32> -> vector<16x64xf32>
    %29 = arith.addf %22, %28 : vector<16x64xf32>
    %30 = vector.extract_strided_slice %24 {offsets = [1, 0], sizes = [16, 64], strides = [1, 1]} : vector<18x64xf32> to vector<16x64xf32>
    %c1_27 = arith.constant 1 : index
    %c1_28 = arith.constant 1 : index
    %c0_29 = arith.constant 0 : index
    %c0_30 = arith.constant 0 : index
    %31 = vector.load %arg5[%c1_27, %c1_28, %c0_29, %c0_30] : memref<3x3x64x64xf32, #tpu.memory_space<vmem>>, vector<1x1x64x64xf32>
    %32 = vector.shape_cast %31 : vector<1x1x64x64xf32> to vector<64x64xf32>
    %cst_31 = arith.constant dense<0.000000e+00> : vector<16x64xf32>
    %33 = tpu.matmul %30, %32, %cst_31 {dimension_numbers = #tpu.dot_dimension_numbers<[1], [0], [0], [1], [0, 0, 1, 1], [], []>} : vector<16x64xf32>, vector<64x64xf32>, vector<16x64xf32> -> vector<16x64xf32>
    %34 = arith.addf %29, %33 : vector<16x64xf32>
    %35 = vector.extract_strided_slice %24 {offsets = [2, 0], sizes = [16, 64], strides = [1, 1]} : vector<18x64xf32> to vector<16x64xf32>
    %c1_32 = arith.constant 1 : index
    %c2_33 = arith.constant 2 : index
    %c0_34 = arith.constant 0 : index
    %c0_35 = arith.constant 0 : index
    %36 = vector.load %arg5[%c1_32, %c2_33, %c0_34, %c0_35] : memref<3x3x64x64xf32, #tpu.memory_space<vmem>>, vector<1x1x64x64xf32>
    %37 = vector.shape_cast %36 : vector<1x1x64x64xf32> to vector<64x64xf32>
    %cst_36 = arith.constant dense<0.000000e+00> : vector<16x64xf32>
    %38 = tpu.matmul %35, %37, %cst_36 {dimension_numbers = #tpu.dot_dimension_numbers<[1], [0], [0], [1], [0, 0, 1, 1], [], []>} : vector<16x64xf32>, vector<64x64xf32>, vector<16x64xf32> -> vector<16x64xf32>
    %39 = arith.addf %34, %38 : vector<16x64xf32>
    %c0_37 = arith.constant 0 : index
    %c0_38 = arith.constant 0 : index
    %c0_39 = arith.constant 0 : index
    %c0_40 = arith.constant 0 : index
    %40 = vector.load %arg4[%c0_37, %c0_38, %c0_39, %c0_40] : memref<1x1x18x64xf32, #tpu.memory_space<vmem>>, vector<1x1x18x64xf32>
    %41 = vector.shape_cast %40 : vector<1x1x18x64xf32> to vector<18x64xf32>
    %42 = vector.extract_strided_slice %41 {offsets = [0, 0], sizes = [16, 64], strides = [1, 1]} : vector<18x64xf32> to vector<16x64xf32>
    %c2_41 = arith.constant 2 : index
    %c0_42 = arith.constant 0 : index
    %c0_43 = arith.constant 0 : index
    %c0_44 = arith.constant 0 : index
    %43 = vector.load %arg5[%c2_41, %c0_42, %c0_43, %c0_44] : memref<3x3x64x64xf32, #tpu.memory_space<vmem>>, vector<1x1x64x64xf32>
    %44 = vector.shape_cast %43 : vector<1x1x64x64xf32> to vector<64x64xf32>
    %cst_45 = arith.constant dense<0.000000e+00> : vector<16x64xf32>
    %45 = tpu.matmul %42, %44, %cst_45 {dimension_numbers = #tpu.dot_dimension_numbers<[1], [0], [0], [1], [0, 0, 1, 1], [], []>} : vector<16x64xf32>, vector<64x64xf32>, vector<16x64xf32> -> vector<16x64xf32>
    %46 = arith.addf %39, %45 : vector<16x64xf32>
    %47 = vector.extract_strided_slice %41 {offsets = [1, 0], sizes = [16, 64], strides = [1, 1]} : vector<18x64xf32> to vector<16x64xf32>
    %c2_46 = arith.constant 2 : index
    %c1_47 = arith.constant 1 : index
    %c0_48 = arith.constant 0 : index
    %c0_49 = arith.constant 0 : index
    %48 = vector.load %arg5[%c2_46, %c1_47, %c0_48, %c0_49] : memref<3x3x64x64xf32, #tpu.memory_space<vmem>>, vector<1x1x64x64xf32>
    %49 = vector.shape_cast %48 : vector<1x1x64x64xf32> to vector<64x64xf32>
    %cst_50 = arith.constant dense<0.000000e+00> : vector<16x64xf32>
    %50 = tpu.matmul %47, %49, %cst_50 {dimension_numbers = #tpu.dot_dimension_numbers<[1], [0], [0], [1], [0, 0, 1, 1], [], []>} : vector<16x64xf32>, vector<64x64xf32>, vector<16x64xf32> -> vector<16x64xf32>
    %51 = arith.addf %46, %50 : vector<16x64xf32>
    %52 = vector.extract_strided_slice %41 {offsets = [2, 0], sizes = [16, 64], strides = [1, 1]} : vector<18x64xf32> to vector<16x64xf32>
    %c2_51 = arith.constant 2 : index
    %c2_52 = arith.constant 2 : index
    %c0_53 = arith.constant 0 : index
    %c0_54 = arith.constant 0 : index
    %53 = vector.load %arg5[%c2_51, %c2_52, %c0_53, %c0_54] : memref<3x3x64x64xf32, #tpu.memory_space<vmem>>, vector<1x1x64x64xf32>
    %54 = vector.shape_cast %53 : vector<1x1x64x64xf32> to vector<64x64xf32>
    %cst_55 = arith.constant dense<0.000000e+00> : vector<16x64xf32>
    %55 = tpu.matmul %52, %54, %cst_55 {dimension_numbers = #tpu.dot_dimension_numbers<[1], [0], [0], [1], [0, 0, 1, 1], [], []>} : vector<16x64xf32>, vector<64x64xf32>, vector<16x64xf32> -> vector<16x64xf32>
    %56 = arith.addf %51, %55 : vector<16x64xf32>
    %57 = vector.shape_cast %56 : vector<16x64xf32> to vector<1x1x16x64xf32>
    %c0_56 = arith.constant 0 : index
    %c0_57 = arith.constant 0 : index
    %c0_58 = arith.constant 0 : index
    %c0_59 = arith.constant 0 : index
    %58 = vector.load %arg6[%c0_56, %c0_57, %c0_58, %c0_59] : memref<1x1x16x64xf32, #tpu.memory_space<vmem>>, vector<1x1x16x64xf32>
    tpu.vector_store %arg6[%c0_56, %c0_57, %c0_58, %c0_59], %57 {strides = array<i32>} : memref<1x1x16x64xf32, #tpu.memory_space<vmem>>, vector<1x1x16x64xf32>,
    %cst_60 = arith.constant 1.000000e+00 : f32
    %59 = vector.broadcast %cst_60 : f32 to vector<1x16xf32>
    %c0_61 = arith.constant 0 : index
    %c0_62 = arith.constant 0 : index
    %60 = vector.load %arg7[%c0_61, %c0_62] : memref<1x64xf32, #tpu.memory_space<vmem>>, vector<1x64xf32>
    %cst_63 = arith.constant dense<0.000000e+00> : vector<1x64xf32>
    %61 = tpu.matmul %59, %56, %cst_63 {dimension_numbers = #tpu.dot_dimension_numbers<[1], [0], [0], [1], [0, 0, 1, 1], [], []>} : vector<1x16xf32>, vector<16x64xf32>, vector<1x64xf32> -> vector<1x64xf32>
    %62 = arith.addf %60, %61 : vector<1x64xf32>
    %c0_64 = arith.constant 0 : index
    %c0_65 = arith.constant 0 : index
    %63 = vector.load %arg7[%c0_64, %c0_65] : memref<1x64xf32, #tpu.memory_space<vmem>>, vector<1x64xf32>
    tpu.vector_store %arg7[%c0_64, %c0_65], %62 {strides = array<i32>} : memref<1x64xf32, #tpu.memory_space<vmem>>, vector<1x64xf32>,
    %c0_66 = arith.constant 0 : index
    %c0_67 = arith.constant 0 : index
    %64 = vector.load %arg8[%c0_66, %c0_67] : memref<1x64xf32, #tpu.memory_space<vmem>>, vector<1x64xf32>
    %65 = arith.mulf %56, %56 : vector<16x64xf32>
    %cst_68 = arith.constant dense<0.000000e+00> : vector<1x64xf32>
    %66 = tpu.matmul %59, %65, %cst_68 {dimension_numbers = #tpu.dot_dimension_numbers<[1], [0], [0], [1], [0, 0, 1, 1], [], []>} : vector<1x16xf32>, vector<16x64xf32>, vector<1x64xf32> -> vector<1x64xf32>
    %67 = arith.addf %64, %66 : vector<1x64xf32>
    %c0_69 = arith.constant 0 : index
    %c0_70 = arith.constant 0 : index
    %68 = vector.load %arg8[%c0_69, %c0_70] : memref<1x64xf32, #tpu.memory_space<vmem>>, vector<1x64xf32>
    tpu.vector_store %arg8[%c0_69, %c0_70], %67 {strides = array<i32>} : memref<1x64xf32, #tpu.memory_space<vmem>>, vector<1x64xf32>,
    return
  }
  func.func @transform_0(%arg0: i32, %arg1: i32) -> (i32, i32, i32, i32) {
    %c0_i32 = arith.constant 0 : i32
    %c0_i32_0 = arith.constant 0 : i32
    %c0_i32_1 = arith.constant 0 : i32
    return %arg0, %arg1, %c0_i32, %c0_i32_0 : i32, i32, i32, i32
  }
  func.func @transform_1(%arg0: i32, %arg1: i32) -> (i32, i32, i32, i32) {
    %c1_i32 = arith.constant 1 : i32
    %0 = arith.addi %arg1, %c1_i32 : i32
    %c0_i32 = arith.constant 0 : i32
    %c0_i32_0 = arith.constant 0 : i32
    %c0_i32_1 = arith.constant 0 : i32
    return %arg0, %0, %c0_i32, %c0_i32_0 : i32, i32, i32, i32
  }
  func.func @transform_2(%arg0: i32, %arg1: i32) -> (i32, i32, i32, i32) {
    %c2_i32 = arith.constant 2 : i32
    %0 = arith.addi %arg1, %c2_i32 : i32
    %c0_i32 = arith.constant 0 : i32
    %c0_i32_0 = arith.constant 0 : i32
    %c0_i32_1 = arith.constant 0 : i32
    return %arg0, %0, %c0_i32, %c0_i32_0 : i32, i32, i32, i32
  }
  func.func @transform_3(%arg0: i32, %arg1: i32) -> (i32, i32, i32, i32) {
    %c0_i32 = arith.constant 0 : i32
    %c0_i32_0 = arith.constant 0 : i32
    %c0_i32_1 = arith.constant 0 : i32
    %c0_i32_2 = arith.constant 0 : i32
    %c0_i32_3 = arith.constant 0 : i32
    return %c0_i32, %c0_i32_0, %c0_i32_1, %c0_i32_2 : i32, i32, i32, i32
  }
  func.func @transform_4(%arg0: i32, %arg1: i32) -> (i32, i32, i32, i32) {
    %c0_i32 = arith.constant 0 : i32
    %c0_i32_0 = arith.constant 0 : i32
    %c0_i32_1 = arith.constant 0 : i32
    return %arg0, %arg1, %c0_i32, %c0_i32_0 : i32, i32, i32, i32
  }
  func.func @transform_5(%arg0: i32, %arg1: i32) -> (i32, i32) {
    %c0_i32 = arith.constant 0 : i32
    %c0_i32_0 = arith.constant 0 : i32
    %c0_i32_1 = arith.constant 0 : i32
    return %c0_i32, %c0_i32_0 : i32, i32
  }
  func.func @transform_6(%arg0: i32, %arg1: i32) -> (i32, i32) {
    %c0_i32 = arith.constant 0 : i32
    %c0_i32_0 = arith.constant 0 : i32
    %c0_i32_1 = arith.constant 0 : i32
    return %c0_i32, %c0_i32_0 : i32, i32
  }
}

module attributes {stable_mosaic.version = 11 : i64} {
  func.func @affine_relu_kernel(%arg0: i32, %arg1: memref<256x64xf32, #tpu.memory_space<vmem>>, %arg2: memref<1x64xf32, #tpu.memory_space<vmem>>, %arg3: memref<1x64xf32, #tpu.memory_space<vmem>>, %arg4: memref<256x64xf32, #tpu.memory_space<vmem>>) attributes {dimension_semantics = [#tpu.dimension_semantics<parallel>], iteration_bounds = array<i64: 2>, scalar_prefetch = 0 : i64, scratch_operands = 0 : i64, tpu.core_type = #tpu.core_type<tc>, window_params = [{transform_indices = @transform_0, window_bounds = array<i64: 256, 64>}, {pipeline_mode = #tpu.pipeline_mode<synchronous>, transform_indices = @transform_1, window_bounds = array<i64: 1, 64>}, {pipeline_mode = #tpu.pipeline_mode<synchronous>, transform_indices = @transform_2, window_bounds = array<i64: 1, 64>}, {transform_indices = @transform_3, window_bounds = array<i64: 256, 64>}]} {
    %c0 = arith.constant 0 : index
    %c0_0 = arith.constant 0 : index
    %0 = vector.load %arg1[%c0, %c0_0] : memref<256x64xf32, #tpu.memory_space<vmem>>, vector<256x64xf32>
    %c0_1 = arith.constant 0 : index
    %c0_2 = arith.constant 0 : index
    %1 = vector.load %arg2[%c0_1, %c0_2] : memref<1x64xf32, #tpu.memory_space<vmem>>, vector<1x64xf32>
    %2 = vector.broadcast %1 : vector<1x64xf32> to vector<256x64xf32>
    %3 = arith.mulf %0, %2 : vector<256x64xf32>
    %c0_3 = arith.constant 0 : index
    %c0_4 = arith.constant 0 : index
    %4 = vector.load %arg3[%c0_3, %c0_4] : memref<1x64xf32, #tpu.memory_space<vmem>>, vector<1x64xf32>
    %5 = vector.broadcast %4 : vector<1x64xf32> to vector<256x64xf32>
    %6 = arith.addf %3, %5 : vector<256x64xf32>
    %cst = arith.constant 0.000000e+00 : f32
    %7 = vector.broadcast %cst : f32 to vector<256x64xf32>
    %8 = arith.maximumf %6, %7 : vector<256x64xf32>
    %c0_5 = arith.constant 0 : index
    %c0_6 = arith.constant 0 : index
    %9 = vector.load %arg4[%c0_5, %c0_6] : memref<256x64xf32, #tpu.memory_space<vmem>>, vector<256x64xf32>
    tpu.vector_store %arg4[%c0_5, %c0_6], %8 {strides = array<i32>} : memref<256x64xf32, #tpu.memory_space<vmem>>, vector<256x64xf32>,
    return
  }
  func.func @transform_0(%arg0: i32) -> (i32, i32) {
    %c0_i32 = arith.constant 0 : i32
    %c0_i32_0 = arith.constant 0 : i32
    return %arg0, %c0_i32 : i32, i32
  }
  func.func @transform_1(%arg0: i32) -> (i32, i32) {
    %c0_i32 = arith.constant 0 : i32
    %c0_i32_0 = arith.constant 0 : i32
    %c0_i32_1 = arith.constant 0 : i32
    return %c0_i32, %c0_i32_0 : i32, i32
  }
  func.func @transform_2(%arg0: i32) -> (i32, i32) {
    %c0_i32 = arith.constant 0 : i32
    %c0_i32_0 = arith.constant 0 : i32
    %c0_i32_1 = arith.constant 0 : i32
    return %c0_i32, %c0_i32_0 : i32, i32
  }
  func.func @transform_3(%arg0: i32) -> (i32, i32) {
    %c0_i32 = arith.constant 0 : i32
    %c0_i32_0 = arith.constant 0 : i32
    return %arg0, %c0_i32 : i32, i32
  }
}

module attributes {stable_mosaic.version = 11 : i64} {
  func.func @affine_residual_kernel(%arg0: i32, %arg1: memref<256x64xf32, #tpu.memory_space<vmem>>, %arg2: memref<256x64xf32, #tpu.memory_space<vmem>>, %arg3: memref<1x64xf32, #tpu.memory_space<vmem>>, %arg4: memref<1x64xf32, #tpu.memory_space<vmem>>, %arg5: memref<256x64xf32, #tpu.memory_space<vmem>>) attributes {dimension_semantics = [#tpu.dimension_semantics<parallel>], iteration_bounds = array<i64: 2>, scalar_prefetch = 0 : i64, scratch_operands = 0 : i64, tpu.core_type = #tpu.core_type<tc>, window_params = [{transform_indices = @transform_0, window_bounds = array<i64: 256, 64>}, {transform_indices = @transform_1, window_bounds = array<i64: 256, 64>}, {pipeline_mode = #tpu.pipeline_mode<synchronous>, transform_indices = @transform_2, window_bounds = array<i64: 1, 64>}, {pipeline_mode = #tpu.pipeline_mode<synchronous>, transform_indices = @transform_3, window_bounds = array<i64: 1, 64>}, {transform_indices = @transform_4, window_bounds = array<i64: 256, 64>}]} {
    %c0 = arith.constant 0 : index
    %c0_0 = arith.constant 0 : index
    %0 = vector.load %arg1[%c0, %c0_0] : memref<256x64xf32, #tpu.memory_space<vmem>>, vector<256x64xf32>
    %c0_1 = arith.constant 0 : index
    %c0_2 = arith.constant 0 : index
    %1 = vector.load %arg3[%c0_1, %c0_2] : memref<1x64xf32, #tpu.memory_space<vmem>>, vector<1x64xf32>
    %2 = vector.broadcast %1 : vector<1x64xf32> to vector<256x64xf32>
    %3 = arith.mulf %0, %2 : vector<256x64xf32>
    %c0_3 = arith.constant 0 : index
    %c0_4 = arith.constant 0 : index
    %4 = vector.load %arg4[%c0_3, %c0_4] : memref<1x64xf32, #tpu.memory_space<vmem>>, vector<1x64xf32>
    %5 = vector.broadcast %4 : vector<1x64xf32> to vector<256x64xf32>
    %6 = arith.addf %3, %5 : vector<256x64xf32>
    %c0_5 = arith.constant 0 : index
    %c0_6 = arith.constant 0 : index
    %7 = vector.load %arg2[%c0_5, %c0_6] : memref<256x64xf32, #tpu.memory_space<vmem>>, vector<256x64xf32>
    %8 = arith.addf %6, %7 : vector<256x64xf32>
    %c0_7 = arith.constant 0 : index
    %c0_8 = arith.constant 0 : index
    %9 = vector.load %arg5[%c0_7, %c0_8] : memref<256x64xf32, #tpu.memory_space<vmem>>, vector<256x64xf32>
    tpu.vector_store %arg5[%c0_7, %c0_8], %8 {strides = array<i32>} : memref<256x64xf32, #tpu.memory_space<vmem>>, vector<256x64xf32>,
    return
  }
  func.func @transform_0(%arg0: i32) -> (i32, i32) {
    %c0_i32 = arith.constant 0 : i32
    %c0_i32_0 = arith.constant 0 : i32
    return %arg0, %c0_i32 : i32, i32
  }
  func.func @transform_1(%arg0: i32) -> (i32, i32) {
    %c0_i32 = arith.constant 0 : i32
    %c0_i32_0 = arith.constant 0 : i32
    return %arg0, %c0_i32 : i32, i32
  }
  func.func @transform_2(%arg0: i32) -> (i32, i32) {
    %c0_i32 = arith.constant 0 : i32
    %c0_i32_0 = arith.constant 0 : i32
    %c0_i32_1 = arith.constant 0 : i32
    return %c0_i32, %c0_i32_0 : i32, i32
  }
  func.func @transform_3(%arg0: i32) -> (i32, i32) {
    %c0_i32 = arith.constant 0 : i32
    %c0_i32_0 = arith.constant 0 : i32
    %c0_i32_1 = arith.constant 0 : i32
    return %c0_i32, %c0_i32_0 : i32, i32
  }
  func.func @transform_4(%arg0: i32) -> (i32, i32) {
    %c0_i32 = arith.constant 0 : i32
    %c0_i32_0 = arith.constant 0 : i32
    return %arg0, %c0_i32 : i32, i32
  }
}

</mosaic_0001>

<bundles_post_ra>
// kernel: residual_block_forward.5
= control target key start
LH: loop header
LB: loop body
LE: loop exit
PB: predicated region body
PF: predicated region fallthrough
CT: control target
= control target key end

     0   :  { %s454_s12 = smov 0   ;;  %s645_s0 = inlined_call_operand.vmem [shape: f32[512,64], index: 0, kind: input, shape index: {}]   ;;  %s646_s1 = inlined_call_operand.vmem [shape: f32[1,64], index: 1, kind: input, shape index: {}]   ;;  %s647_s2 = inlined_call_operand.vmem [shape: f32[1,64], index: 2, kind: input, shape index: {}]   ;;  %s648_s3 = inlined_call_operand.vmem [shape: f32[512,64], index: 3, kind: output, shape index: {}]  }
   0x1 LB: > { %s405_s13 = sadd.s32 4294967295, %s432_s12   ;;  %p409_p0 = scmp.ge.s32.totalorder %s432_s12, 1  ;;  %s432_s12 = sphi %s454_s12, %s13_s12  }
   0x2   : > { %p138_p1 = scmp.lt.s32.totalorder %s432_s12, 3 }
   0x4   : > { %p139_p2 = pnand %p409_p0, %p138_p1 }
   0x5   : > { %s410_s14 = sshll.u32 (!%p139_p2), %s405_s13, 5 }
   0x6   : > { %142 = sbr.rel (%p139_p2) target bundleno = 44 (0x2c), region = 32  ;;  %p163_p3 = scmp.lt.s32.totalorder (!%p139_p2), %s410_s14, 63 }
   0xb   : > { %s650_s14 = smov (!%p163_p3, %s410_s14), 63  ;;  %v465_v0 = vld [vmem:[%s646_s1] ss:$0 sm:$0xff]  ;;  %vm316_vm0 = vcmask 523264  }
   0xc   : > { %s411_s15 = sshll.u32 %s650_s14, 3  ;;  %v475_v1 = vld [vmem:[%s647_s2] ss:$0 sm:$0xff] }
   0xd   : > { %s470_s20 = scalar_lea.vmem %s645_s0, %s411_s15  ;;  %s498_s25 = scalar_lea.vmem %s648_s3, %s411_s15 }
   0xe   : > { %v174_v2 = vld [vmem:[%s470_s20] sm:$0xff]  ;;  %v175_v3 = vld [vmem:[%s470_s20 + $0x8] sm:$0xff]  ;;  %v176_v4 = vld [vmem:[%s470_s20 + $0x10] sm:$0xff] }
   0xf   : > { %v213_v5 = vmul.f32 %v465_v0, %v174_v2  ;;  %v214_v6 = vmul.f32 %v465_v0, %v175_v3  ;;  %v215_v7 = vmul.f32 %v465_v0, %v176_v4  ;;  %v177_v8 = vld [vmem:[%s470_s20 + $0x18] sm:$0xff]  ;;  %v178_v9 = vld [vmem:[%s470_s20 + $0x20] sm:$0xff]  ;;  %v179_v10 = vld [vmem:[%s470_s20 + $0x28] sm:$0xff] }
  0x10   : > { %v216_v11 = vmul.f32 %v465_v0, %v177_v8  ;;  %v217_v12 = vmul.f32 %v465_v0, %v178_v9  ;;  %v218_v13 = vmul.f32 %v465_v0, %v179_v10  ;;  %v180_v14 = vld [vmem:[%s470_s20 + $0x30] sm:$0xff]  ;;  %v181_v15 = vld [vmem:[%s470_s20 + $0x38] sm:$0xff]  ;;  %v182_v24 = vld [vmem:[%s470_s20 + $0x40] sm:$0xff] }
  0x11   : > { %v252_v16 = vadd.f32 %v475_v1, %v213_v5  ;;  %v253_v17 = vadd.f32 %v475_v1, %v214_v6  ;;  %v254_v18 = vadd.f32 %v475_v1, %v215_v7  ;;  %v219_v19 = vmul.f32 %v465_v0, %v180_v14  ;;  %v183_v25 = vld [vmem:[%s470_s20 + $0x48] sm:$0xff]  ;;  %v184_v26 = vld [vmem:[%s470_s20 + $0x50] sm:$0xff]  ;;  %v185_v31 = vld [vmem:[%s470_s20 + $0x58] sm:$0xff] }
  0x12   : > { %v255_v20 = vadd.f32 %v475_v1, %v216_v11  ;;  %v256_v21 = vadd.f32 %v475_v1, %v217_v12  ;;  %v257_v22 = vadd.f32 %v475_v1, %v218_v13  ;;  %v220_v23 = vmul.f32 %v465_v0, %v181_v15  ;;  %v186_v32 = vld [vmem:[%s470_s20 + $0x60] sm:$0xff]  ;;  %v187_v33 = vld [vmem:[%s470_s20 + $0x68] sm:$0xff]  ;;  %v188_v38 = vld [vmem:[%s470_s20 + $0x70] sm:$0xff] }
  0x13   : > { %v284_v27 = vmax.f32 %v252_v16, 0.0  ;;  %v285_v28 = vmax.f32 %v253_v17, 0.0  ;;  %v286_v29 = vmax.f32 %v254_v18, 0.0  ;;  %v258_v30 = vadd.f32 %v475_v1, %v219_v19  ;;  %v189_v43 = vld [vmem:[%s470_s20 + $0x78] sm:$0xff]  ;;  %v190_v56 = vld [vmem:[%s470_s20 + $0x80] sm:$0xff]  ;;  %v191_v57 = vld [vmem:[%s470_s20 + $0x88] sm:$0xff] }
  0x14   : > { %v287_v34 = vmax.f32 %v255_v20, 0.0  ;;  %v288_v35 = vmax.f32 %v256_v21, 0.0  ;;  %v289_v36 = vmax.f32 %v257_v22, 0.0  ;;  %v259_v37 = vadd.f32 %v475_v1, %v220_v23  ;;  %v192_v58 = vld [vmem:[%s470_s20 + $0x90] sm:$0xff]  ;;  %v193_v63 = vld [vmem:[%s470_s20 + $0x98] sm:$0xff]  ;;  %v194_v2 = vld [vmem:[%s470_s20 + $0xa0] sm:$0xff] }
  0x15   : > { %317 = vst.msk [vmem:[%s498_s25] sm:$0xff] %vm316_vm0, %v284_v27  ;;  %318 = vst.msk [vmem:[%s498_s25 + $0x8] sm:$0xff] %vm316_vm0, %v285_v28  ;;  %v290_v39 = vmax.f32 %v258_v30, 0.0  ;;  %v221_v40 = vmul.f32 %v465_v0, %v182_v24  ;;  %v222_v41 = vmul.f32 %v465_v0, %v183_v25  ;;  %v223_v42 = vmul.f32 %v465_v0, %v184_v26  ;;  %v195_v3 = vld [vmem:[%s470_s20 + $0xa8] sm:$0xff]  ;;  %v196_v8 = vld [vmem:[%s470_s20 + $0xb0] sm:$0xff] }
  0x16   : > { %319 = vst.msk [vmem:[%s498_s25 + $0x10] sm:$0xff] %vm316_vm0, %v286_v29  ;;  %320 = vst.msk [vmem:[%s498_s25 + $0x18] sm:$0xff] %vm316_vm0, %v287_v34  ;;  %v291_v44 = vmax.f32 %v259_v37, 0.0  ;;  %v224_v45 = vmul.f32 %v465_v0, %v185_v31  ;;  %v225_v46 = vmul.f32 %v465_v0, %v186_v32  ;;  %v226_v47 = vmul.f32 %v465_v0, %v187_v33  ;;  %v197_v13 = vld [vmem:[%s470_s20 + $0xb8] sm:$0xff]  ;;  %v198_v26 = vld [vmem:[%s470_s20 + $0xc0] sm:$0xff] }
  0x17   : > { %321 = vst.msk [vmem:[%s498_s25 + $0x20] sm:$0xff] %vm316_vm0, %v288_v35  ;;  %322 = vst.msk [vmem:[%s498_s25 + $0x28] sm:$0xff] %vm316_vm0, %v289_v36  ;;  %v260_v48 = vadd.f32 %v475_v1, %v221_v40  ;;  %v261_v49 = vadd.f32 %v475_v1, %v222_v41  ;;  %v262_v50 = vadd.f32 %v475_v1, %v223_v42  ;;  %v199_v27 = vld [vmem:[%s470_s20 + $0xc8] sm:$0xff]  ;;  %v200_v28 = vld [vmem:[%s470_s20 + $0xd0] sm:$0xff] }
  0x18   : > { %323 = vst.msk [vmem:[%s498_s25 + $0x30] sm:$0xff] %vm316_vm0, %v290_v39  ;;  %v227_v51 = vmul.f32 %v465_v0, %v188_v38  ;;  %324 = vst.msk [vmem:[%s498_s25 + $0x38] sm:$0xff] %vm316_vm0, %v291_v44  ;;  %v263_v52 = vadd.f32 %v475_v1, %v224_v45  ;;  %v264_v53 = vadd.f32 %v475_v1, %v225_v46  ;;  %v201_v33 = vld [vmem:[%s470_s20 + $0xd8] sm:$0xff]  ;;  %v202_v34 = vld [vmem:[%s470_s20 + $0xe0] sm:$0xff] }
  0x19   : > { %v265_v54 = vadd.f32 %v475_v1, %v226_v47  ;;  %v228_v55 = vmul.f32 %v465_v0, %v189_v43  ;;  %v292_v59 = vmax.f32 %v260_v48, 0.0  ;;  %v293_v60 = vmax.f32 %v261_v49, 0.0  ;;  %v203_v35 = vld [vmem:[%s470_s20 + $0xe8] sm:$0xff]  ;;  %v204_v40 = vld [vmem:[%s470_s20 + $0xf0] sm:$0xff]  ;;  %v205_v45 = vld [vmem:[%s470_s20 + $0xf8] sm:$0xff] }
  0x1a   : > { %v294_v61 = vmax.f32 %v262_v50, 0.0  ;;  %v266_v62 = vadd.f32 %v475_v1, %v227_v51  ;;  %v295_v4 = vmax.f32 %v263_v52, 0.0  ;;  %v296_v5 = vmax.f32 %v264_v53, 0.0 }
  0x1b   : > { %v297_v6 = vmax.f32 %v265_v54, 0.0  ;;  %v267_v7 = vadd.f32 %v475_v1, %v228_v55  ;;  %325 = vst.msk [vmem:[%s498_s25 + $0x40] sm:$0xff] %vm316_vm0, %v292_v59  ;;  %326 = vst.msk [vmem:[%s498_s25 + $0x48] sm:$0xff] %vm316_vm0, %v293_v60  ;;  %v229_v10 = vmul.f32 %v465_v0, %v190_v56  ;;  %v230_v11 = vmul.f32 %v465_v0, %v191_v57 }
  0x1c   : > { %327 = vst.msk [vmem:[%s498_s25 + $0x50] sm:$0xff] %vm316_vm0, %v294_v61  ;;  %v298_v9 = vmax.f32 %v266_v62, 0.0  ;;  %v231_v12 = vmul.f32 %v465_v0, %v192_v58  ;;  %328 = vst.msk [vmem:[%s498_s25 + $0x58] sm:$0xff] %vm316_vm0, %v295_v4  ;;  %v232_v15 = vmul.f32 %v465_v0, %v193_v63  ;;  %v233_v16 = vmul.f32 %v465_v0, %v194_v2 }
  0x1d   : > { %329 = vst.msk [vmem:[%s498_s25 + $0x60] sm:$0xff] %vm316_vm0, %v296_v5  ;;  %330 = vst.msk [vmem:[%s498_s25 + $0x68] sm:$0xff] %vm316_vm0, %v297_v6  ;;  %v299_v14 = vmax.f32 %v267_v7, 0.0  ;;  %v234_v17 = vmul.f32 %v465_v0, %v195_v3  ;;  %v268_v18 = vadd.f32 %v475_v1, %v229_v10  ;;  %v269_v19 = vadd.f32 %v475_v1, %v230_v11 }
  0x1e   : > { %331 = vst.msk [vmem:[%s498_s25 + $0x70] sm:$0xff] %vm316_vm0, %v298_v9  ;;  %v270_v20 = vadd.f32 %v475_v1, %v231_v12  ;;  %v235_v21 = vmul.f32 %v465_v0, %v196_v8  ;;  %v271_v22 = vadd.f32 %v475_v1, %v232_v15  ;;  %v272_v23 = vadd.f32 %v475_v1, %v233_v16 }
  0x1f   : > { %332 = vst.msk [vmem:[%s498_s25 + $0x78] sm:$0xff] %vm316_vm0, %v299_v14  ;;  %v273_v24 = vadd.f32 %v475_v1, %v234_v17  ;;  %v236_v25 = vmul.f32 %v465_v0, %v197_v13  ;;  %v300_v29 = vmax.f32 %v268_v18, 0.0  ;;  %v301_v30 = vmax.f32 %v269_v19, 0.0 }
  0x20   : > { %v302_v31 = vmax.f32 %v270_v20, 0.0  ;;  %v274_v32 = vadd.f32 %v475_v1, %v235_v21  ;;  %v303_v36 = vmax.f32 %v271_v22, 0.0  ;;  %v304_v37 = vmax.f32 %v272_v23, 0.0 }
  0x21   : > { %v305_v38 = vmax.f32 %v273_v24, 0.0  ;;  %v275_v39 = vadd.f32 %v475_v1, %v236_v25  ;;  %333 = vst.msk [vmem:[%s498_s25 + $0x80] sm:$0xff] %vm316_vm0, %v300_v29  ;;  %334 = vst.msk [vmem:[%s498_s25 + $0x88] sm:$0xff] %vm316_vm0, %v301_v30  ;;  %v237_v42 = vmul.f32 %v465_v0, %v198_v26  ;;  %v238_v43 = vmul.f32 %v465_v0, %v199_v27 }
  0x22   : > { %335 = vst.msk [vmem:[%s498_s25 + $0x90] sm:$0xff] %vm316_vm0, %v302_v31  ;;  %v306_v41 = vmax.f32 %v274_v32, 0.0  ;;  %v239_v44 = vmul.f32 %v465_v0, %v200_v28  ;;  %336 = vst.msk [vmem:[%s498_s25 + $0x98] sm:$0xff] %vm316_vm0, %v303_v36  ;;  %v240_v47 = vmul.f32 %v465_v0, %v201_v33  ;;  %v241_v48 = vmul.f32 %v465_v0, %v202_v34 }
  0x23   : > { %337 = vst.msk [vmem:[%s498_s25 + $0xa0] sm:$0xff] %vm316_vm0, %v304_v37  ;;  %338 = vst.msk [vmem:[%s498_s25 + $0xa8] sm:$0xff] %vm316_vm0, %v305_v38  ;;  %v307_v46 = vmax.f32 %v275_v39, 0.0  ;;  %v242_v49 = vmul.f32 %v465_v0, %v203_v35  ;;  %v276_v50 = vadd.f32 %v475_v1, %v237_v42  ;;  %v277_v51 = vadd.f32 %v475_v1, %v238_v43 }
  0x24   : > { %339 = vst.msk [vmem:[%s498_s25 + $0xb0] sm:$0xff] %vm316_vm0, %v306_v41  ;;  %v278_v52 = vadd.f32 %v475_v1, %v239_v44  ;;  %v243_v53 = vmul.f32 %v465_v0, %v204_v40  ;;  %v279_v54 = vadd.f32 %v475_v1, %v240_v47  ;;  %v280_v55 = vadd.f32 %v475_v1, %v241_v48 }
  0x25   : > { %340 = vst.msk [vmem:[%s498_s25 + $0xb8] sm:$0xff] %vm316_vm0, %v307_v46  ;;  %v281_v56 = vadd.f32 %v475_v1, %v242_v49  ;;  %v244_v57 = vmul.f32 %v465_v0, %v205_v45  ;;  %v308_v58 = vmax.f32 %v276_v50, 0.0  ;;  %v309_v59 = vmax.f32 %v277_v51, 0.0 }
  0x26   : > { %v310_v60 = vmax.f32 %v278_v52, 0.0  ;;  %v282_v61 = vadd.f32 %v475_v1, %v243_v53  ;;  %v311_v62 = vmax.f32 %v279_v54, 0.0  ;;  %v312_v63 = vmax.f32 %v280_v55, 0.0 }
  0x27   : > { %v313_v2 = vmax.f32 %v281_v56, 0.0  ;;  %v283_v3 = vadd.f32 %v475_v1, %v244_v57  ;;  %341 = vst.msk [vmem:[%s498_s25 + $0xc0] sm:$0xff] %vm316_vm0, %v308_v58  ;;  %342 = vst.msk [vmem:[%s498_s25 + $0xc8] sm:$0xff] %vm316_vm0, %v309_v59 }
  0x28   : > { %343 = vst.msk [vmem:[%s498_s25 + $0xd0] sm:$0xff] %vm316_vm0, %v310_v60  ;;  %v314_v4 = vmax.f32 %v282_v61, 0.0  ;;  %344 = vst.msk [vmem:[%s498_s25 + $0xd8] sm:$0xff] %vm316_vm0, %v311_v62 }
  0x29   : > { %345 = vst.msk [vmem:[%s498_s25 + $0xe0] sm:$0xff] %vm316_vm0, %v312_v63  ;;  %346 = vst.msk [vmem:[%s498_s25 + $0xe8] sm:$0xff] %vm316_vm0, %v313_v2  ;;  %v315_v0 = vmax.f32 %v283_v3, 0.0 }
  0x2a   : > { %347 = vst.msk [vmem:[%s498_s25 + $0xf0] sm:$0xff] %vm316_vm0, %v314_v4 }
  0x2b   : > { %348 = vst.msk [vmem:[%s498_s25 + $0xf8] sm:$0xff] %vm316_vm0, %v315_v0 }
  0x2c PF: > { %s13_s12 = sadd.s32 1, %s432_s12  }
  0x2d   : > { %p10_p4 = scmp.ge.s32.totalorder %s13_s12, 4  }
  0x2f   :  { %12 = sbr.rel (!%p10_p4) target bundleno = 1 (0x1), region = 62 }

// kernel: residual_block_forward.4
= control target key start
LH: loop header
LB: loop body
LE: loop exit
PB: predicated region body
PF: predicated region fallthrough
CT: control target
= control target key end

     0   :  { %s2039_s21 = smov 0   ;;  %s2041_s22 = smov 0   ;;  %s2421_s0 = inlined_call_operand.vmem [shape: f32[2,18,18,64], index: 0, kind: input, shape index: {}, may-alias: {0,1,2}]   ;;  %s2422_s1 = inlined_call_operand.vmem [shape: f32[2,18,18,64], index: 1, kind: input, shape index: {}, may-alias: {0,1,2}]   ;;  %s2423_s2 = inlined_call_operand.vmem [shape: f32[2,18,18,64], index: 2, kind: input, shape index: {}, may-alias: {0,1,2}]   ;;  %s2424_s3 = inlined_call_operand.vmem [shape: f32[3,3,64,64], index: 3, kind: input, shape index: {}]   ;;  %s2425_s4 = inlined_call_operand.vmem [shape: f32[2,16,16,64], index: 4, kind: output, shape index: {0}]   ;;  %s2426_s5 = inlined_call_operand.vmem [shape: f32[1,64], index: 5, kind: output, shape index: {1}]   ;;  %s2427_s6 = inlined_call_operand.vmem [shape: f32[1,64], index: 6, kind: output, shape index: {2}]  }
   0x1   :  { %2428 = sst [smem:[#allocation3_spill]] %s2421_s0  ;;  %s2043_s23 = smov 0  }
   0x2   :  { %s2045_s24 = smov 0   ;;  %s2047_s25 = smov 0  }
   0x3 LB: > { %s26_s26 = sadd.s32 1, %s1990_s23  ;;  %s29_s27 = sadd.s32 1, %s1994_s24  ;;  %s1998_s25 = sphi %s2047_s25, %s17_s25   ;;  %s1994_s24 = sphi %s2045_s24, %s2435_s24   ;;  %s1990_s23 = sphi %s2043_s23, %s2434_s23   ;;  %s1986_s22 = sphi %s2041_s22, %s2433_s22   ;;  %s1982_s21 = sphi %s2039_s21, %s2432_s21  }
   0x4   : > { %p27_p0 = scmp.ge.s32.totalorder %s26_s26, 16  ;;  %p1538_p1 = scmp.ge.s32.totalorder %s1998_s25, 1 }
   0x5   : > { %p267_p2 = scmp.lt.s32.totalorder %s1998_s25, 33 }
   0x6   : > { %s2437_s26 = smov (%p27_p0, %s26_s26), 0  ;;  %s2439_s27 = smov (!%p27_p0, %s29_s27), %s1994_s24 }
   0x7   : > { %p268_p3 = pnand %p1538_p1, %p267_p2  ;;  %p31_p4 = scmp.ge.s32.totalorder %s2439_s27, 2 }
   0x8   : > { %p325_p5 = scmp.lt.s32.totalorder (!%p268_p3), %s1986_s22, 1  ;;  %p327_p6 = scmp.lt.s32.totalorder (!%p268_p3), %s1982_s21, 17 }
   0x9   : > { %s2441_s27 = smov (%p31_p4, %s2439_s27), 0  ;;  %271 = sbr.rel (%p268_p3) target bundleno = 521 (0x209), region = 36 }
   0xa   : > { %2429 = sst [smem:[#allocation2_spill]] %s2441_s27  ;;  %s334_s28 = sadd.s32 (!%p268_p3), 1, %s1982_s21 }
   0xb   : > { %s345_s29 = sadd.s32 (!%p268_p3), 2, %s1982_s21  ;;  %p337_p7 = scmp.lt.s32.totalorder (!%p268_p3), %s334_s28, 17 }
   0xc   : > { %p348_p8 = scmp.lt.s32.totalorder (!%p268_p3), %s345_s29, 17  ;;  %s2430_s0 = sld [smem:[#allocation3_spill]] (!%p268_p3) }
   0xd   : > { %p358_p9 = scmp.lt.s32.totalorder (!%p268_p3), %s1982_s21, 15  ;;  %p365_p10 = scmp.eq.s32.totalorder (!%p268_p3), %s1986_s22, 0 }
   0xe   : > { %s326_s30 = scalar_select %p325_p5, %s1986_s22, 1 }
   0xf   : > { %s328_s7 = scalar_select %p327_p6, %s1982_s21, 17 }
  0x10   : > { %s1913_s8 = smul.u32 54, %s326_s30  ;;  %s2443_s28 = smov (!%p337_p7, %s334_s28), 17 }
  0x11   : > { %s1912_s9 = smul.u32 3, %s328_s7  ;;  %p366_p11 = scmp.eq.s32.totalorder %s1982_s21, 0 }
  0x12   : > { %s1914_s12 = smul.u32 3, %s2443_s28  ;;  %s1543_s7 = sshll.u32 %s326_s30, 5 }
  0x13   : > { %s331_s10 = sadd.s32 %s1913_s8, %s1912_s9  ;;  %s2445_s29 = smov (!%p348_p8, %s345_s29), 17 }
  0x14   : > { %s1539_s11 = sshll.u32 %s331_s10, 3  ;;  %s341_s16 = sadd.s32 %s1914_s12, %s1913_s8 }
  0x15   : > { %s2082_s15 = scalar_lea.vmem %s2430_s0, %s1539_s11  ;;  %s1540_s17 = sshll.u32 %s341_s16, 3 }
  0x16   : > { %s2090_s20 = scalar_lea.vmem %s2422_s1, %s1540_s17  ;;  %s2447_s21 = smov (!%p358_p9, %s1982_s21), 15 }
  0x17   : > { %s1915_s9 = smul.u32 3, %s2445_s29  ;;  %p367_p12 = pnand %p366_p11, %p365_p10 }
  0x18   : > { %s1542_s28 = sshll.u32 %s2447_s21, 1 }
  0x19   : > { %s352_s10 = sadd.s32 %s1915_s9, %s1913_s8  ;;  %s362_s13 = sadd.s32 %s1543_s7, %s1542_s28 }
  0x1a   : > { %s1541_s11 = sshll.u32 %s352_s10, 3  ;;  %s1544_s14 = sshll.u32 %s362_s13, 3 }
  0x1b   : > { %s2096_s22 = scalar_lea.vmem %s2423_s2, %s1541_s11  ;;  %s2101_s17 = scalar_lea.vmem %s2425_s4, %s1544_s14 }
  0x1c   : > { %370 = sbr.rel (%p367_p12) target bundleno = 35 (0x23), region = 40 }
  0x21   : > { %vm371_vm0 = vcmask 516096   ;;  %v2000_v0 = vmov 0.0  }
  0x22   : > { %372 = vst.msk [vmem:[%s2426_s5] sm:$0x1] %vm371_vm0, %v2000_v0  ;;  %373 = vst.msk [vmem:[%s2427_s6] sm:$0x1] %vm371_vm0, %v2000_v0 }
  0x23 PF: > { %v1552_v1 = vld [vmem:[%s2424_s3 + $0x78] sm:$0xff]  ;;  %v1551_v3 = vld [vmem:[%s2424_s3 + $0x70] sm:$0xff]  ;;  %v1550_v5 = vld [vmem:[%s2424_s3 + $0x68] sm:$0xff]  ;;  %vm397_vm1 = vcmask 1046528   ;;  %vm403_vm2 = vcmask 523264   ;;  %vm571_vm3 = vcmask 1045504  }
  0x24   : > { %v384_v2 = vld [vmem:[%s2424_s3 + $0x38] sm:$0xff]  ;;  %1727 = vmatprep.subr.mxu0 %v1552_v1  ;;  %v383_v4 = vld [vmem:[%s2424_s3 + $0x30] sm:$0xff]  ;;  %v382_v6 = vld [vmem:[%s2424_s3 + $0x28] sm:$0xff]  ;;  %vm2002_vm4 = vmmov 0   ;;  %vm1233_vm5 = vcmask 130048   ;;  %vm1308_vm6 = vcmask 516096  }
  0x25   : > { %1746 = vmatprep.subr.mxu1 %v384_v2  ;;  %1728 = vmatpush3.msra.mxu0 %v1552_v1  ;;  %v1549_v7 = vld [vmem:[%s2424_s3 + $0x60] sm:$0xff]  ;;  %v1548_v9 = vld [vmem:[%s2424_s3 + $0x58] sm:$0xff]  ;;  %v2143_v12 = vld [vmem:[%s2082_s15 + $0x8] sm:$0xff] }
  0x26   : > { %1747 = vmatpush3.msra.mxu1 %v384_v2  ;;  %1729 = vmatprep.subr.mxu0 %v1551_v3  ;;  %v381_v8 = vld [vmem:[%s2424_s3 + $0x20] sm:$0xff]  ;;  %v380_v10 = vld [vmem:[%s2424_s3 + $0x18] sm:$0xff]  ;;  %v1547_v13 = vld [vmem:[%s2424_s3 + $0x50] sm:$0xff]  ;;  %v399_v17 = vrot.slane %v2143_v12, 1  ;;  %v573_v36 = vrot.slane %v2143_v12, 2 }
  0x27   : > { %1748 = vmatprep.subr.mxu1 %v383_v4  ;;  %1730 = vmatpush3.msra.mxu0 %v1551_v3  ;;  %v2140_v11 = vld [vmem:[%s2082_s15] sm:$0xff]  ;;  %v379_v14 = vld [vmem:[%s2424_s3 + $0x10] sm:$0xff]  ;;  %v1546_v18 = vld [vmem:[%s2424_s3 + $0x48] sm:$0xff] }
  0x28   : > { %1749 = vmatpush3.msra.mxu1 %v383_v4  ;;  %1731 = vmatprep.subr.mxu0 %v1550_v5  ;;  %v2152_v15 = vld [vmem:[%s2082_s15 + $0x10] sm:$0x3]  ;;  %v398_v16 = vrot.slane %v2140_v11, 1  ;;  %v378_v19 = vld [vmem:[%s2424_s3 + $0x8] sm:$0xff]  ;;  %v1545_v21 = vld [vmem:[%s2424_s3 + $0x40] sm:$0xff]  ;;  %v572_v35 = vrot.slane %v2140_v11, 2 }
  0x29   : > { %1750 = vmatprep.subr.mxu1 %v382_v6  ;;  %1732 = vmatpush3.msra.mxu0 %v1550_v5  ;;  %v401_v20 = vrot.slane %v2152_v15, 1  ;;  %v377_v22 = vld [vmem:[%s2424_s3] sm:$0xff]  ;;  %v1564_v25 = vld [vmem:[%s2424_s3 + $0xb8] sm:$0xff]  ;;  %v1563_v27 = vld [vmem:[%s2424_s3 + $0xb0] sm:$0xff]  ;;  %v575_v39 = vrot.slane %v2152_v15, 2 }
  0x2a   : > { %1751 = vmatpush3.msra.mxu1 %v382_v6  ;;  %1733 = vmatprep.subr.mxu0 %v1549_v7  ;;  %v400_v23 = vsel %vm397_vm1, %v398_v16, %v399_v17  ;;  %v1574_v26 = vld [vmem:[%s2424_s3 + $0xf8] sm:$0xff]  ;;  %v1573_v28 = vld [vmem:[%s2424_s3 + $0xf0] sm:$0xff]  ;;  %v1562_v29 = vld [vmem:[%s2424_s3 + $0xa8] sm:$0xff]  ;;  %v574_v42 = vsel %vm571_vm3, %v572_v35, %v573_v36 }
  0x2b   : > { %1752 = vmatprep.subr.mxu1 %v381_v8  ;;  %1734 = vmatpush3.msra.mxu0 %v1549_v7  ;;  %v402_v24 = vsel %vm397_vm1, %v399_v17, %v401_v20  ;;  %v1572_v30 = vld [vmem:[%s2424_s3 + $0xe8] sm:$0xff]  ;;  %v1561_v31 = vld [vmem:[%s2424_s3 + $0xa0] sm:$0xff]  ;;  %v1560_v33 = vld [vmem:[%s2424_s3 + $0x98] sm:$0xff]  ;;  %v576_v45 = vsel %vm571_vm3, %v573_v36, %v575_v39 }
  0x2c   : > { %1753 = vmatpush3.msra.mxu1 %v381_v8  ;;  %1735 = vmatprep.subr.mxu0 %v1548_v9  ;;  %v1571_v32 = vld [vmem:[%s2424_s3 + $0xe0] sm:$0xff]  ;;  %v1570_v34 = vld [vmem:[%s2424_s3 + $0xd8] sm:$0xff]  ;;  %v1559_v37 = vld [vmem:[%s2424_s3 + $0x90] sm:$0xff] }
  0x2d   : > { %1754 = vmatprep.subr.mxu1 %v380_v10  ;;  %1736 = vmatpush3.msra.mxu0 %v1548_v9  ;;  %v1569_v38 = vld [vmem:[%s2424_s3 + $0xd0] sm:$0xff]  ;;  %v1558_v40 = vld [vmem:[%s2424_s3 + $0x88] sm:$0xff]  ;;  %v1557_v43 = vld [vmem:[%s2424_s3 + $0x80] sm:$0xff] }
  0x2e   : > { %1755 = vmatpush3.msra.mxu1 %v380_v10  ;;  %1737 = vmatprep.subr.mxu0 %v1547_v13  ;;  %v1568_v41 = vld [vmem:[%s2424_s3 + $0xc8] sm:$0xff]  ;;  %v1567_v44 = vld [vmem:[%s2424_s3 + $0xc0] sm:$0xff]  ;;  %v1584_v46 = vld [vmem:[%s2424_s3 + $0x138] sm:$0xff] }
  0x2f   : > { %1756 = vmatprep.subr.mxu1 %v379_v14  ;;  %1738 = vmatpush3.msra.mxu0 %v1547_v13  ;;  %v2235_v47 = vld [vmem:[%s2090_s20] sm:$0xff]  ;;  %v2238_v48 = vld [vmem:[%s2090_s20 + $0x8] sm:$0xff]  ;;  %v1583_v49 = vld [vmem:[%s2424_s3 + $0x130] sm:$0xff] }
  0x30   : > { %1757 = vmatpush3.msra.mxu1 %v379_v14  ;;  %1739 = vmatprep.subr.mxu0 %v1546_v18  ;;  %v1594_v50 = vld [vmem:[%s2424_s3 + $0x178] sm:$0xff]  ;;  %v1582_v51 = vld [vmem:[%s2424_s3 + $0x128] sm:$0xff]  ;;  %v1593_v52 = vld [vmem:[%s2424_s3 + $0x170] sm:$0xff]  ;;  %v763_v60 = vrot.slane %v2235_v47, 1  ;;  %v764_v61 = vrot.slane %v2238_v48, 1  ;;  %v858_v1 = vrot.slane %v2235_v47, 2 }
  0x31   : > { %1758 = vmatprep.subr.mxu1 %v378_v19  ;;  %1740 = vmatpush3.msra.mxu0 %v1546_v18  ;;  %v1581_v53 = vld [vmem:[%s2424_s3 + $0x120] sm:$0xff]  ;;  %v1592_v54 = vld [vmem:[%s2424_s3 + $0x168] sm:$0xff]  ;;  %v1580_v55 = vld [vmem:[%s2424_s3 + $0x118] sm:$0xff]  ;;  %v859_v4 = vrot.slane %v2238_v48, 2 }
  0x32   : > { %1759 = vmatpush3.msra.mxu1 %v378_v19  ;;  %1741 = vmatprep.subr.mxu0 %v1545_v21  ;;  %v1591_v56 = vld [vmem:[%s2424_s3 + $0x160] sm:$0xff]  ;;  %v660_v57 = vld [vmem:[%s2090_s20 + $0x10] sm:$0x3]  ;;  %v1590_v59 = vld [vmem:[%s2424_s3 + $0x158] sm:$0xff]  ;;  %v765_v5 = vsel %vm397_vm1, %v763_v60, %v764_v61 }
  0x33   : > { %1760 = vmatprep.subr.mxu1 %v377_v22  ;;  %1742 = vmatpush3.msra.mxu0 %v1545_v21  ;;  %v1579_v58 = vld [vmem:[%s2424_s3 + $0x110] sm:$0xff]  ;;  %v1578_v62 = vld [vmem:[%s2424_s3 + $0x108] sm:$0xff]  ;;  %v766_v0 = vrot.slane %v660_v57, 1  ;;  %v1577_v2 = vld [vmem:[%s2424_s3 + $0x100] sm:$0xff]  ;;  %v861_v6 = vrot.slane %v660_v57, 2  ;;  %v860_v10 = vsel %vm571_vm3, %v858_v1, %v859_v4 }
  0x34   : > { %1743 = vmatprep.mubr.msk.f32.mxu0 %vm403_vm2, %v400_v23  ;;  %1761 = vmatpush3.msra.mxu1 %v377_v22  ;;  %v1589_v63 = vld [vmem:[%s2424_s3 + $0x150] sm:$0xff]  ;;  %v1588_v3 = vld [vmem:[%s2424_s3 + $0x148] sm:$0xff]  ;;  %v1587_v8 = vld [vmem:[%s2424_s3 + $0x140] sm:$0xff] }
  0x35   : > { %1762 = vmatprep.mubr.msk.f32.mxu1 %vm403_vm2, %v2140_v11  ;;  %1744 = vmatmul.mubr.msk.f32.vlgmr.msra.gmra.mxu0 %vm403_vm2, %v402_v24  ;;  %v767_v7 = vsel %vm397_vm1, %v764_v61, %v766_v0  ;;  %v1604_v9 = vld [vmem:[%s2424_s3 + $0x1b8] sm:$0xff]  ;;  %v862_v11 = vsel %vm571_vm3, %v859_v4, %v861_v6  ;;  %v1602_v14 = vld [vmem:[%s2424_s3 + $0x1a8] sm:$0xff]  ;;  %v1613_v15 = vld [vmem:[%s2424_s3 + $0x1f0] sm:$0xff] }
  0x36   : > { %1763 = vmatmul.mubr.msk.f32.vlgmr.msra.gmra.mxu1 %vm403_vm2, %v2143_v12  ;;  %1765 = vmatprep.subr.mxu0 %v1564_v25  ;;  %v1603_v12 = vld [vmem:[%s2424_s3 + $0x1b0] sm:$0xff]  ;;  %v1614_v13 = vld [vmem:[%s2424_s3 + $0x1f8] sm:$0xff]  ;;  %v1601_v16 = vld [vmem:[%s2424_s3 + $0x1a0] sm:$0xff] }
  0x37   : > { %1784 = vmatprep.subr.mxu1 %v1574_v26  ;;  %1766 = vmatpush3.msra.mxu0 %v1564_v25  ;;  %v1612_v17 = vld [vmem:[%s2424_s3 + $0x1e8] sm:$0xff]  ;;  %v1600_v18 = vld [vmem:[%s2424_s3 + $0x198] sm:$0xff]  ;;  %v1611_v19 = vld [vmem:[%s2424_s3 + $0x1e0] sm:$0xff] }
  0x38   : > { %1785 = vmatpush3.msra.mxu1 %v1574_v26  ;;  %1767 = vmatprep.subr.mxu0 %v1563_v27  ;;  %v1599_v20 = vld [vmem:[%s2424_s3 + $0x190] sm:$0xff]  ;;  %v1610_v21 = vld [vmem:[%s2424_s3 + $0x1d8] sm:$0xff]  ;;  %v944_v22 = vld [vmem:[%s2096_s22] sm:$0xff] }
  0x39   : > { %1786 = vmatprep.subr.mxu1 %v1573_v28  ;;  %1768 = vmatpush3.msra.mxu0 %v1563_v27  ;;  %v945_v23 = vld [vmem:[%s2096_s22 + $0x8] sm:$0xff]  ;;  %v1609_v25 = vld [vmem:[%s2424_s3 + $0x1d0] sm:$0xff]  ;;  %v1597_v27 = vld [vmem:[%s2424_s3 + $0x180] sm:$0xff] }
  0x3a   : > { %1787 = vmatpush3.msra.mxu1 %v1573_v28  ;;  %1769 = vmatprep.subr.mxu0 %v1562_v29  ;;  %v1598_v24 = vld [vmem:[%s2424_s3 + $0x188] sm:$0xff]  ;;  %v946_v26 = vld [vmem:[%s2096_s22 + $0x10] sm:$0x3]  ;;  %v1624_v35 = vld [vmem:[%s2424_s3 + $0x238] sm:$0xff] }
  0x3b   : > { %1788 = vmatprep.subr.mxu1 %v1572_v30  ;;  %1770 = vmatpush3.msra.mxu0 %v1562_v29  ;;  %v1608_v28 = vld [vmem:[%s2424_s3 + $0x1c8] sm:$0xff]  ;;  %v1049_v29 = vrot.slane %v944_v22, 1 }
  0x3c   : > { %1789 = vmatpush3.msra.mxu1 %v1572_v30  ;;  %1771 = vmatprep.subr.mxu0 %v1561_v31  ;;  %v1050_v30 = vrot.slane %v945_v23, 1 }
  0x3d   : > { %1790 = vmatprep.subr.mxu1 %v1571_v32  ;;  %1772 = vmatpush3.msra.mxu0 %v1561_v31  ;;  %v1052_v31 = vrot.slane %v946_v26, 1 }
  0x3e   : > { %1791 = vmatpush3.msra.mxu1 %v1571_v32  ;;  %1773 = vmatprep.subr.mxu0 %v1560_v33  ;;  %v1144_v32 = vrot.slane %v944_v22, 2  ;;  %v1051_v36 = vsel %vm397_vm1, %v1049_v29, %v1050_v30 }
  0x3f   : > { %1792 = vmatprep.subr.mxu1 %v1570_v34  ;;  %1774 = vmatpush3.msra.mxu0 %v1560_v33  ;;  %v1145_v33 = vrot.slane %v945_v23, 2 }
  0x40   : > { %1793 = vmatpush3.msra.mxu1 %v1570_v34  ;;  %1775 = vmatprep.subr.mxu0 %v1559_v37  ;;  %v1607_v34 = vld [vmem:[%s2424_s3 + $0x1c0] sm:$0xff] }
  0x41   : > { %1794 = vmatprep.subr.mxu1 %v1569_v38  ;;  %1776 = vmatpush3.msra.mxu0 %v1559_v37  ;;  %v1053_v37 = vsel %vm397_vm1, %v1050_v30, %v1052_v31  ;;  %v1146_v39 = vsel %vm571_vm3, %v1144_v32, %v1145_v33 }
  0x42   : > { %1795 = vmatpush3.msra.mxu1 %v1569_v38  ;;  %1777 = vmatprep.subr.mxu0 %v1558_v40  ;;  %v1623_v38 = vld [vmem:[%s2424_s3 + $0x230] sm:$0xff] }
  0x43   : > { %1796 = vmatprep.subr.mxu1 %v1568_v41  ;;  %1778 = vmatpush3.msra.mxu0 %v1558_v40  ;;  %v1622_v40 = vld [vmem:[%s2424_s3 + $0x228] sm:$0xff] }
  0x44   : > { %1781 = vmatprep.mubr.msk.f32.mxu0 %vm403_vm2, %v574_v42  ;;  %1779 = vmatprep.subr.mxu0 %v1557_v43  ;;  %v1620_v42 = vld [vmem:[%s2424_s3 + $0x218] sm:$0xff] }
  0x45   : > { %1797 = vmatpush3.msra.mxu1 %v1568_v41  ;;  %1780 = vmatpush3.msra.mxu0 %v1557_v43  ;;  %v1621_v41 = vld [vmem:[%s2424_s3 + $0x220] sm:$0xff]  ;;  %v1619_v43 = vld [vmem:[%s2424_s3 + $0x210] sm:$0xff] }
  0x46   : > { %1798 = vmatprep.subr.mxu1 %v1567_v44  ;;  %1782 = vmatmul.mubr.msk.f32.vlgmr.msra.gmra.mxu0 %vm403_vm2, %v576_v45  ;;  %v1147_v45 = vrot.slane %v946_v26, 2  ;;  %v1310_v26 = vld [vmem:[%s2427_s6] sm:$0x1] }
  0x47   : > { %1803 = vmatprep.subr.mxu0 %v1584_v46  ;;  %1799 = vmatpush3.msra.mxu1 %v1567_v44  ;;  %v1618_v44 = vld [vmem:[%s2424_s3 + $0x208] sm:$0xff] }
  0x48   : > { %1800 = vmatprep.mubr.msk.f32.mxu1 %vm403_vm2, %v2235_v47  ;;  %1804 = vmatpush3.msra.mxu0 %v1584_v46  ;;  %v1617_v46 = vld [vmem:[%s2424_s3 + $0x200] sm:$0xff]  ;;  %v1148_v47 = vsel %vm571_vm3, %v1145_v33, %v1147_v45 }
  0x49   : > { %1801 = vmatmul.mubr.msk.f32.vlgmr.msra.gmra.mxu1 %vm403_vm2, %v2238_v48  ;;  %1805 = vmatprep.subr.mxu0 %v1583_v49  ;;  %v2001_v48 = vmov 0.0  }
  0x4a   : > { %1822 = vmatprep.subr.mxu1 %v1594_v50  ;;  %1806 = vmatpush3.msra.mxu0 %v1583_v49 }
  0x4b   : > { %1823 = vmatpush3.msra.mxu1 %v1594_v50  ;;  %1807 = vmatprep.subr.mxu0 %v1582_v51 }
  0x4c   : > { %1824 = vmatprep.subr.mxu1 %v1593_v52  ;;  %1808 = vmatpush3.msra.mxu0 %v1582_v51 }
  0x4d   : > { %1825 = vmatpush3.msra.mxu1 %v1593_v52  ;;  %1809 = vmatprep.subr.mxu0 %v1581_v53 }
  0x4e   : > { %1826 = vmatprep.subr.mxu1 %v1592_v54  ;;  %1810 = vmatpush3.msra.mxu0 %v1581_v53 }
  0x4f   : > { %1827 = vmatpush3.msra.mxu1 %v1592_v54  ;;  %1811 = vmatprep.subr.mxu0 %v1580_v55 }
  0x50   : > { %1828 = vmatprep.subr.mxu1 %v1591_v56  ;;  %1812 = vmatpush3.msra.mxu0 %v1580_v55 }
  0x51   : > { %1829 = vmatpush3.msra.mxu1 %v1591_v56  ;;  %1813 = vmatprep.subr.mxu0 %v1579_v58 }
  0x52   : > { %1830 = vmatprep.subr.mxu1 %v1590_v59  ;;  %1814 = vmatpush3.msra.mxu0 %v1579_v58 }
  0x53   : > { %1831 = vmatpush3.msra.mxu1 %v1590_v59  ;;  %1815 = vmatprep.subr.mxu0 %v1578_v62 }
  0x54   : > { %1832 = vmatprep.subr.mxu1 %v1589_v63  ;;  %1816 = vmatpush3.msra.mxu0 %v1578_v62 }
  0x55   : > { %1833 = vmatpush3.msra.mxu1 %v1589_v63  ;;  %1817 = vmatprep.subr.mxu0 %v1577_v2 }
  0x56   : > { %1834 = vmatprep.subr.mxu1 %v1588_v3  ;;  %1818 = vmatpush3.msra.mxu0 %v1577_v2 }
  0x57   : > { %1819 = vmatprep.mubr.msk.f32.mxu0 %vm403_vm2, %v765_v5  ;;  %1835 = vmatpush3.msra.mxu1 %v1588_v3 }
  0x58   : > { %1820 = vmatmul.mubr.msk.f32.vlgmr.msra.gmra.mxu0 %vm403_vm2, %v767_v7  ;;  %1836 = vmatprep.subr.mxu1 %v1587_v8 }
  0x59   : > { %1841 = vmatprep.subr.mxu0 %v1604_v9  ;;  %1837 = vmatpush3.msra.mxu1 %v1587_v8 }
  0x5a   : > { %1838 = vmatprep.mubr.msk.f32.mxu1 %vm403_vm2, %v860_v10  ;;  %1842 = vmatpush3.msra.mxu0 %v1604_v9 }
  0x5b   : > { %1839 = vmatmul.mubr.msk.f32.vlgmr.msra.gmra.mxu1 %vm403_vm2, %v862_v11  ;;  %1843 = vmatprep.subr.mxu0 %v1603_v12 }
  0x5c   : > { %1860 = vmatprep.subr.mxu1 %v1614_v13  ;;  %1844 = vmatpush3.msra.mxu0 %v1603_v12 }
  0x5d   : > { %1861 = vmatpush3.msra.mxu1 %v1614_v13  ;;  %1845 = vmatprep.subr.mxu0 %v1602_v14 }
  0x5e   : > { %1862 = vmatprep.subr.mxu1 %v1613_v15  ;;  %1846 = vmatpush3.msra.mxu0 %v1602_v14 }
  0x5f   : > { %1863 = vmatpush3.msra.mxu1 %v1613_v15  ;;  %1847 = vmatprep.subr.mxu0 %v1601_v16 }
  0x60   : > { %1864 = vmatprep.subr.mxu1 %v1612_v17  ;;  %1848 = vmatpush3.msra.mxu0 %v1601_v16 }
  0x61   : > { %1865 = vmatpush3.msra.mxu1 %v1612_v17  ;;  %1849 = vmatprep.subr.mxu0 %v1600_v18 }
  0x62   : > { %1866 = vmatprep.subr.mxu1 %v1611_v19  ;;  %1850 = vmatpush3.msra.mxu0 %v1600_v18 }
  0x63   : > { %1867 = vmatpush3.msra.mxu1 %v1611_v19  ;;  %1851 = vmatprep.subr.mxu0 %v1599_v20 }
  0x64   : > { %1868 = vmatprep.subr.mxu1 %v1610_v21  ;;  %1852 = vmatpush3.msra.mxu0 %v1599_v20  ;;  %v2003_v20 = vmov 1.0  }
  0x65   : > { %1869 = vmatpush3.msra.mxu1 %v1610_v21  ;;  %1853 = vmatprep.subr.mxu0 %v1598_v24 }
  0x66   : > { %1870 = vmatprep.subr.mxu1 %v1609_v25  ;;  %1854 = vmatpush3.msra.mxu0 %v1598_v24 }
  0x67   : > { %1871 = vmatpush3.msra.mxu1 %v1609_v25  ;;  %1855 = vmatprep.subr.mxu0 %v1597_v27 }
  0x68   : > { %1872 = vmatprep.subr.mxu1 %v1608_v28  ;;  %1856 = vmatpush3.msra.mxu0 %v1597_v27 }
  0x69   : > { %1857 = vmatprep.mubr.msk.f32.mxu0 %vm403_vm2, %v944_v22  ;;  %1873 = vmatpush3.msra.mxu1 %v1608_v28  ;;  %v1232_v22 = vld [vmem:[%s2426_s5] sm:$0x1] }
  0x6a   : > { %1858 = vmatmul.mubr.msk.f32.vlgmr.msra.gmra.mxu0 %vm403_vm2, %v945_v23  ;;  %1874 = vmatprep.subr.mxu1 %v1607_v34 }
  0x6b   : > { %1879 = vmatprep.subr.mxu0 %v1624_v35  ;;  %1875 = vmatpush3.msra.mxu1 %v1607_v34 }
  0x6c   : > { %1876 = vmatprep.mubr.msk.f32.mxu1 %vm403_vm2, %v1051_v36  ;;  %1880 = vmatpush3.msra.mxu0 %v1624_v35 }
  0x6d   : > { %1877 = vmatmul.mubr.msk.f32.vlgmr.msra.gmra.mxu1 %vm403_vm2, %v1053_v37  ;;  %1881 = vmatprep.subr.mxu0 %v1623_v38 }
  0x6e   : > { %1895 = vmatprep.mubr.msk.f32.mxu0 %vm403_vm2, %v1146_v39  ;;  %1882 = vmatpush3.msra.mxu0 %v1623_v38 }
  0x6f   : > { %1883 = vmatprep.subr.mxu0 %v1622_v40  ;;  %1898 = vmatprep.subr.mxu1 %v2001_v48 }
  0x70   : > { %1884 = vmatpush3.msra.mxu0 %v1622_v40  ;;  %1902 = vmatprep.mubr.msk.f32.mxu1 %vm2002_vm4, %v2001_v48 }
  0x71   : > { %1885 = vmatprep.subr.mxu0 %v1621_v41 }
  0x72   : > { %1886 = vmatpush3.msra.mxu0 %v1621_v41 }
  0x73   : > { %1887 = vmatprep.subr.mxu0 %v1620_v42 }
  0x74   : > { %1888 = vmatpush3.msra.mxu0 %v1620_v42 }
  0x75   : > { %1889 = vmatprep.subr.mxu0 %v1619_v43 }
  0x76   : > { %1890 = vmatpush3.msra.mxu0 %v1619_v43 }
  0x77   : > { %1891 = vmatprep.subr.mxu0 %v1618_v44 }
  0x78   : > { %1892 = vmatpush3.msra.mxu0 %v1618_v44 }
  0x79   : > { %1893 = vmatprep.subr.mxu0 %v1617_v46 }
  0x7a   : > { %1894 = vmatpush3.msra.mxu0 %v1617_v46 }
  0x7b   : > { %1896 = vmatmul.mubr.msk.f32.vlgmr.msra.gmra.mxu0 %vm403_vm2, %v1148_v47 }
  0xf5   : > { %v1745_v49 = vpop.f32.mrf.mxu0 }
  0xf6   : > { %v1764_v50 = vpop.f32.mrf.mxu1 }
  0xf7   : > { %v474_v51 = vpop.f32.mrf.mxu0  ;;  %v559_v54 = vadd.f32 %v1764_v50, %v1745_v49 }
  0xf8   : > { %v553_v53 = vpop.f32.mrf.mxu1 }
  0xf9   : > { %v554_v57 = vadd.f32 %v553_v53, %v474_v51 }
 0x106   : > { %v1783_v52 = vpop.f32.mrf.mxu0 }
 0x107   : > { %v657_v58 = vadd.f32 %v1783_v52, %v559_v54 }
 0x108   : > { %v647_v55 = vpop.f32.mrf.mxu0 }
 0x109   : > { %v1802_v56 = vpop.f32.mrf.mxu1  ;;  %v656_v60 = vadd.f32 %v647_v55, %v554_v57 }
 0x10a   : > { %v752_v62 = vadd.f32 %v1802_v56, %v657_v58 }
 0x10b   : > { %v742_v61 = vpop.f32.mrf.mxu1 }
 0x10c   : > { %v751_v1 = vadd.f32 %v742_v61, %v656_v60 }
 0x118   : > { %v1821_v59 = vpop.f32.mrf.mxu0 }
 0x119   : > { %v848_v2 = vadd.f32 %v1821_v59, %v752_v62 }
 0x11a   : > { %v838_v63 = vpop.f32.mrf.mxu0 }
 0x11b   : > { %v1840_v0 = vpop.f32.mrf.mxu1  ;;  %v847_v4 = vadd.f32 %v838_v63, %v751_v1 }
 0x11c   : > { %v943_v6 = vadd.f32 %v1840_v0, %v848_v2 }
 0x11d   : > { %v933_v5 = vpop.f32.mrf.mxu1 }
 0x11e   : > { %v942_v9 = vadd.f32 %v933_v5, %v847_v4 }
 0x12a   : > { %v1859_v3 = vpop.f32.mrf.mxu0 }
 0x12b   : > { %v1038_v10 = vadd.f32 %v1859_v3, %v943_v6 }
 0x12c   : > { %v1028_v7 = vpop.f32.mrf.mxu0 }
 0x12d   : > { %v1878_v8 = vpop.f32.mrf.mxu1  ;;  %v1037_v11 = vadd.f32 %v1028_v7, %v942_v9 }
 0x12e   : > { %v1134_v13 = vadd.f32 %v1878_v8, %v1038_v10 }
 0x12f   : > { %v1124_v12 = vpop.f32.mrf.mxu1 }
 0x130   : > { %v1133_v15 = vadd.f32 %v1124_v12, %v1037_v11 }
 0x13b   : > { %v1897_v14 = vpop.f32.mrf.mxu0 }
 0x13c   : > { %v1229_v16 = vadd.f32 %v1897_v14, %v1134_v13 }
 0x13d   : > { %v1219_v17 = vpop.f32.mrf.mxu0 }
 0x13e   : > { %1231 = vst.msk [vmem:[%s2101_s17 + $0x8] sm:$0xff] %vm403_vm2, %v1229_v16  ;;  %v1228_v18 = vadd.f32 %v1219_v17, %v1133_v15  ;;  %1899 = vmatpush3.msra.mxu1 %v1229_v16  ;;  %v1312_v19 = vmul.f32 %v1229_v16, %v1229_v16 }
 0x13f   : > { %1900 = vmatprep.subr.mxu1 %v2001_v48 }
 0x140   : > { %1230 = vst.msk [vmem:[%s2101_s17] sm:$0xff] %vm403_vm2, %v1228_v18  ;;  %1901 = vmatpush3.msra.mxu1 %v1228_v18  ;;  %v1311_v21 = vmul.f32 %v1228_v18, %v1228_v18 }
 0x141   : > { %1903 = vmatmul.mubr.msk.f32.vlgmr.msra.gmra.mxu1 %vm1233_vm5, %v2003_v20  ;;  %1905 = vmatprep.subr.mxu1 %v2001_v48 }
 0x142   : > { %1906 = vmatpush3.msra.mxu1 %v1312_v19  ;;  %1909 = vmatprep.mubr.msk.f32.mxu1 %vm2002_vm4, %v2001_v48 }
 0x143   : > { %1907 = vmatprep.subr.mxu1 %v2001_v48 }
 0x144   : > { %1908 = vmatpush3.msra.mxu1 %v1311_v21 }
 0x145   : > { %1910 = vmatmul.mubr.msk.f32.vlgmr.msra.gmra.mxu1 %vm1233_vm5, %v2003_v20 }
 0x201   : > { %v1303_v23 = vpop.f32.mrf.mxu1 }
 0x202   : > { %v1307_v24 = vadd.f32 %v1303_v23, %v1232_v22 }
 0x203   : > { %v1904_v25 = vpop.f32.mrf.mxu1 }
 0x204   : > { %1309 = vst.msk [vmem:[%s2426_s5] sm:$0x1] %vm1308_vm6, %v1307_v24 }
 0x205   : > { %v1379_v27 = vpop.f32.mrf.mxu1 }
 0x206   : > { %v1383_v28 = vadd.f32 %v1379_v27, %v1310_v26 }
 0x207   : > { %v1911_v29 = vpop.f32.mrf.mxu1 }
 0x208   : > { %1384 = vst.msk [vmem:[%s2427_s6] sm:$0x1] %vm1308_vm6, %v1383_v28 }
 0x209 PF: > { %s17_s25 = sadd.s32 1, %s1998_s25   ;;  %s2431_s19 = sld [smem:[#allocation2_spill]] }
 0x20a   : > { %p14_p13 = scmp.ge.s32.totalorder %s17_s25, 34   ;;  %s2432_s21 = smov %s1990_s23 }
 0x20b   : > { %s2433_s22 = smov %s1994_s24  ;;  %s2434_s23 = smov %s2437_s26 }
 0x20c   :  { %16 = sbr.rel (!%p14_p13) target bundleno = 3 (0x3), region = 100 }
 0x20f   : > { %s2435_s24 = smov %s2431_s19 }

// kernel: residual_block_forward.7
= control target key start
LH: loop header
LB: loop body
LE: loop exit
PB: predicated region body
PF: predicated region fallthrough
CT: control target
= control target key end

     0   :  { %9 = vsyncpa [#allocation3], 0  ;;  %s984_s0 = inlined_call_operand.vmem [shape: f32[512,64], index: 0, kind: input, shape index: {}]   ;;  %s985_s1 = inlined_call_operand.vmem [shape: f32[512,64], index: 1, kind: input, shape index: {}]   ;;  %s986_s2 = inlined_call_operand.vmem [shape: f32[1,64], index: 2, kind: input, shape index: {}]   ;;  %s987_s3 = inlined_call_operand.vmem [shape: f32[1,64], index: 3, kind: input, shape index: {}]   ;;  %s988_s4 = inlined_call_operand.hbm [shape: f32[512,64], index: 4, kind: output, shape index: {}]  }
   0x1   :  { %11 = vsyncpa [#allocation3 + $0x1], 0  ;;  %s664_s15 = smov 0   ;;  %s666_s16 = smov 0  }
   0x2   :  { %s668_s17 = smov 0   ;;  %s670_s18 = smov 0  }
   0x3 LB: > { %s685_s19 = sadd.s32 4294967295, %s634_s18   ;;  %s516_s20 = sadd.s32 4294967294, %s634_s18   ;;  %s634_s18 = sphi %s670_s18, %s994_s18   ;;  %s630_s17 = sphi %s668_s17, %s993_s17   ;;  %s626_s16 = sphi %s666_s16, %s992_s16   ;;  %s622_s15 = sphi %s664_s15, %s991_s15  }
   0x4   : > { %s689_s21 = sadd.s32 1, %s634_s18   ;;  %s118_s22 = sadd.s32 1, %s630_s17 }
   0x5   : > { %s115_s23 = ssub.s32 %s634_s18, %s689_s21  ;;  %p128_p0 = scmp.ne.s32.totalorder %s630_s17, %s626_s16 }
   0x6   : > { %p116_p1 = scmp.eq.s32.totalorder %s115_s23, 0  ;;  %p129_p2 = scmp.eq.s32.totalorder %s685_s19, 1 }
   0x7   : > { %p134_p3 = scmp.ne.s32.totalorder %s626_s16, %s622_s15  ;;  %p135_p4 = scmp.eq.s32.totalorder %s516_s20, 1 }
   0x8   : > { %s700_s24 = scalar_select %p116_p1, %s630_s17, %s118_s22  }
   0x9   : > { %p702_p5 = por %p129_p2, %p128_p0  ;;  %p706_p6 = por %p135_p4, %p134_p3 }
   0xa   : > { %p519_p7 = scmp.ge.s32.totalorder %s634_s18, 1  ;;  %p177_p8 = scmp.lt.s32.totalorder %s634_s18, 3 }
   0xc   : > { %p178_p9 = pnand %p519_p7, %p177_p8 }
   0xd   : > { %s521_s27 = sshll.u32 (!%p178_p9), %s685_s19, 5  ;;  %s205_s28 = sand.u32 (!%p178_p9), 1, %s626_s16  }
   0xe   : > { %181 = sbr.rel (%p178_p9) target bundleno = 68 (0x44), region = 36  ;;  %p209_p10 = scmp.lt.s32.totalorder (!%p178_p9), %s521_s27, 63 }
   0xf   : > { %s738_s14 = sshll.u32 (!%p178_p9), %s205_s28, 8  ;;  %s532_s22 = sshll.u32 (!%p178_p9), %s685_s19, 12 }
  0x10   : > { %s771_s20 = scalar_lea.vmem (!%p178_p9), [#allocation2], %s738_s14  ;;  %s944_s30 = scalar_lea.sflag (!%p178_p9), [#allocation3], %s205_s28 }
  0x11   : > { %s442_s23 = sshll.u32 (!%p178_p9), %s771_s20, 4  ;;  %s636_s6 = smov (!%p178_p9), [#allocation2]   ;;  %s934_s23 = int_to_ptr.vmem [resolvable:$true] %s442_s23 }
  0x12   : > { %s574_s5 = scalar_lea.vmem (!%p178_p9), %s934_s23, 4096  ;;  %s578_s7 = sshll.u32 (!%p178_p9), %s636_s6, 4  ;;  %s579_s7 = int_to_ptr.vmem [resolvable:$false] %s578_s7 }
  0x13   : > { %s996_s27 = smov (!%p209_p10, %s521_s27), 63  ;;  %v717_v0 = vld [vmem:[%s986_s2] ss:$0 sm:$0xff]  ;;  %vm395_vm0 = vcmask 523264   ;;  %p575_p11 = scmp.ne.s32.totalorder %s934_s23, %s574_s5 }
  0x14   : > { %s522_s29 = sshll.u32 %s996_s27, 3  ;;  %v733_v2 = vld [vmem:[%s987_s3] ss:$0 sm:$0xff]  ;;  %p581_p0 = scmp.lt.s32.totalorder %s934_s23, %s579_s7 }
  0x15   : > { %s722_s8 = scalar_lea.vmem %s984_s0, %s522_s29  ;;  %s727_s11 = scalar_lea.vmem %s985_s1, %s522_s29 }
  0x16   : > { %v221_v1 = vld [vmem:[%s722_s8] sm:$0xff]  ;;  %v222_v3 = vld [vmem:[%s722_s8 + $0x8] sm:$0xff]  ;;  %v223_v7 = vld [vmem:[%s722_s8 + $0x10] sm:$0xff]  ;;  %s932_s29 = scalar_lea.hbm %s988_s4, %s532_s22  ;;  %p576_p12 = pnand %p575_p11, %p702_p5 }
  0x17   : > { %v260_v4 = vmul.f32 %v717_v0, %v221_v1  ;;  %v331_v5 = vld [vmem:[%s727_s11] sm:$0xff]  ;;  %v261_v6 = vmul.f32 %v717_v0, %v222_v3  ;;  %v332_v8 = vld [vmem:[%s727_s11 + $0x8] sm:$0xff]  ;;  %v262_v9 = vmul.f32 %v717_v0, %v223_v7  ;;  %v224_v10 = vld [vmem:[%s722_s8 + $0x18] sm:$0xff] }
  0x18   : > { %v225_v11 = vld [vmem:[%s722_s8 + $0x20] sm:$0xff]  ;;  %v333_v14 = vld [vmem:[%s727_s11 + $0x10] sm:$0xff]  ;;  %v263_v15 = vmul.f32 %v717_v0, %v224_v10  ;;  %v334_v16 = vld [vmem:[%s727_s11 + $0x18] sm:$0xff]  ;;  %p577_p13 = pneg %p576_p12 }
  0x19   : > { %v299_v12 = vadd.f32 %v733_v2, %v260_v4  ;;  %v300_v13 = vadd.f32 %v733_v2, %v261_v6  ;;  %v264_v17 = vmul.f32 %v717_v0, %v225_v11  ;;  %v226_v18 = vld [vmem:[%s722_s8 + $0x28] sm:$0xff]  ;;  %v301_v19 = vadd.f32 %v733_v2, %v262_v9  ;;  %v335_v20 = vld [vmem:[%s727_s11 + $0x20] sm:$0xff]  ;;  %v227_v22 = vld [vmem:[%s722_s8 + $0x30] sm:$0xff] }
  0x1a   : > { %v265_v21 = vmul.f32 %v717_v0, %v226_v18  ;;  %v228_v23 = vld [vmem:[%s722_s8 + $0x38] sm:$0xff]  ;;  %v302_v26 = vadd.f32 %v733_v2, %v263_v15  ;;  %v336_v28 = vld [vmem:[%s727_s11 + $0x28] sm:$0xff]  ;;  %v229_v29 = vld [vmem:[%s722_s8 + $0x40] sm:$0xff]  ;;  %v266_v32 = vmul.f32 %v717_v0, %v227_v22 }
  0x1b   : > { %v363_v24 = vadd.f32 %v331_v5, %v299_v12  ;;  %v364_v25 = vadd.f32 %v332_v8, %v300_v13  ;;  %v303_v27 = vadd.f32 %v733_v2, %v264_v17  ;;  %v365_v30 = vadd.f32 %v333_v14, %v301_v19  ;;  %v337_v33 = vld [vmem:[%s727_s11 + $0x30] sm:$0xff]  ;;  %v230_v35 = vld [vmem:[%s722_s8 + $0x48] sm:$0xff]  ;;  %v338_v39 = vld [vmem:[%s727_s11 + $0x38] sm:$0xff] }
  0x1c   : > { %v304_v31 = vadd.f32 %v733_v2, %v265_v21  ;;  %v267_v34 = vmul.f32 %v717_v0, %v228_v23  ;;  %v231_v36 = vld [vmem:[%s722_s8 + $0x50] sm:$0xff]  ;;  %v366_v37 = vadd.f32 %v334_v16, %v302_v26  ;;  %v268_v40 = vmul.f32 %v717_v0, %v229_v29  ;;  %v339_v41 = vld [vmem:[%s727_s11 + $0x40] sm:$0xff]  ;;  %v232_v43 = vld [vmem:[%s722_s8 + $0x58] sm:$0xff] }
  0x1d   : > { %396 = vst.msk [vmem:[%s771_s20] sm:$0xff] %vm395_vm0, %v363_v24  ;;  %397 = vst.msk [vmem:[%s771_s20 + $0x8] sm:$0xff] %vm395_vm0, %v364_v25  ;;  %v367_v38 = vadd.f32 %v335_v20, %v303_v27  ;;  %v269_v42 = vmul.f32 %v717_v0, %v230_v35  ;;  %v305_v45 = vadd.f32 %v733_v2, %v266_v32  ;;  %v340_v47 = vld [vmem:[%s727_s11 + $0x48] sm:$0xff]  ;;  %v233_v49 = vld [vmem:[%s722_s8 + $0x60] sm:$0xff] }
  0x1e   : > { %398 = vst.msk [vmem:[%s771_s20 + $0x10] sm:$0xff] %vm395_vm0, %v365_v30  ;;  %v368_v44 = vadd.f32 %v336_v28, %v304_v31  ;;  %v306_v46 = vadd.f32 %v733_v2, %v267_v34  ;;  %v270_v48 = vmul.f32 %v717_v0, %v231_v36  ;;  %v234_v50 = vld [vmem:[%s722_s8 + $0x68] sm:$0xff]  ;;  %399 = vst.msk [vmem:[%s771_s20 + $0x18] sm:$0xff] %vm395_vm0, %v366_v37  ;;  %v341_v53 = vld [vmem:[%s727_s11 + $0x50] sm:$0xff] }
  0x1f   : > { %400 = vst.msk [vmem:[%s771_s20 + $0x20] sm:$0xff] %vm395_vm0, %v367_v38  ;;  %v307_v51 = vadd.f32 %v733_v2, %v268_v40  ;;  %v308_v52 = vadd.f32 %v733_v2, %v269_v42  ;;  %v271_v54 = vmul.f32 %v717_v0, %v232_v43  ;;  %v342_v55 = vld [vmem:[%s727_s11 + $0x58] sm:$0xff]  ;;  %v272_v56 = vmul.f32 %v717_v0, %v233_v49  ;;  %v235_v57 = vld [vmem:[%s722_s8 + $0x70] sm:$0xff]  ;;  %v343_v61 = vld [vmem:[%s727_s11 + $0x60] sm:$0xff] }
  0x20   : > { %401 = vst.msk [vmem:[%s771_s20 + $0x28] sm:$0xff] %vm395_vm0, %v368_v44  ;;  %v369_v58 = vadd.f32 %v337_v33, %v305_v45  ;;  %v370_v59 = vadd.f32 %v338_v39, %v306_v46  ;;  %v309_v60 = vadd.f32 %v733_v2, %v270_v48  ;;  %v273_v62 = vmul.f32 %v717_v0, %v234_v50  ;;  %v236_v63 = vld [vmem:[%s722_s8 + $0x78] sm:$0xff]  ;;  %v237_v1 = vld [vmem:[%s722_s8 + $0x80] sm:$0xff]  ;;  %v344_v7 = vld [vmem:[%s727_s11 + $0x68] sm:$0xff] }
  0x21   : > { %v371_v3 = vadd.f32 %v339_v41, %v307_v51  ;;  %v372_v4 = vadd.f32 %v340_v47, %v308_v52  ;;  %v310_v5 = vadd.f32 %v733_v2, %v271_v54  ;;  %v311_v6 = vadd.f32 %v733_v2, %v272_v56  ;;  %v238_v8 = vld [vmem:[%s722_s8 + $0x88] sm:$0xff]  ;;  %v345_v12 = vld [vmem:[%s727_s11 + $0x70] sm:$0xff]  ;;  %v240_v15 = vld [vmem:[%s722_s8 + $0x98] sm:$0xff] }
  0x22   : > { %402 = vst.msk [vmem:[%s771_s20 + $0x30] sm:$0xff] %vm395_vm0, %v369_v58  ;;  %403 = vst.msk [vmem:[%s771_s20 + $0x38] sm:$0xff] %vm395_vm0, %v370_v59  ;;  %v373_v9 = vadd.f32 %v341_v53, %v309_v60  ;;  %v312_v10 = vadd.f32 %v733_v2, %v273_v62  ;;  %v274_v11 = vmul.f32 %v717_v0, %v235_v57  ;;  %v239_v14 = vld [vmem:[%s722_s8 + $0x90] sm:$0xff]  ;;  %v346_v18 = vld [vmem:[%s727_s11 + $0x78] sm:$0xff] }
  0x23   : > { %v275_v13 = vmul.f32 %v717_v0, %v236_v63  ;;  %404 = vst.msk [vmem:[%s771_s20 + $0x40] sm:$0xff] %vm395_vm0, %v371_v3  ;;  %405 = vst.msk [vmem:[%s771_s20 + $0x48] sm:$0xff] %vm395_vm0, %v372_v4  ;;  %v374_v16 = vadd.f32 %v342_v55, %v310_v5  ;;  %v375_v17 = vadd.f32 %v343_v61, %v311_v6  ;;  %v347_v20 = vld [vmem:[%s727_s11 + $0x80] sm:$0xff]  ;;  %v348_v26 = vld [vmem:[%s727_s11 + $0x88] sm:$0xff] }
  0x24   : > { %v276_v19 = vmul.f32 %v717_v0, %v237_v1  ;;  %v277_v21 = vmul.f32 %v717_v0, %v238_v8  ;;  %v241_v22 = vld [vmem:[%s722_s8 + $0xa0] sm:$0xff]  ;;  %406 = vst.msk [vmem:[%s771_s20 + $0x50] sm:$0xff] %vm395_vm0, %v373_v9  ;;  %v376_v23 = vadd.f32 %v344_v7, %v312_v10  ;;  %v313_v24 = vadd.f32 %v733_v2, %v274_v11  ;;  %v349_v28 = vld [vmem:[%s727_s11 + $0x90] sm:$0xff]  ;;  %v242_v29 = vld [vmem:[%s722_s8 + $0xa8] sm:$0xff] }
  0x25   : > { %v314_v25 = vadd.f32 %v733_v2, %v275_v13  ;;  %v278_v27 = vmul.f32 %v717_v0, %v239_v14  ;;  %407 = vst.msk [vmem:[%s771_s20 + $0x58] sm:$0xff] %vm395_vm0, %v374_v16  ;;  %408 = vst.msk [vmem:[%s771_s20 + $0x60] sm:$0xff] %vm395_vm0, %v375_v17  ;;  %v279_v32 = vmul.f32 %v717_v0, %v240_v15  ;;  %v350_v33 = vld [vmem:[%s727_s11 + $0x98] sm:$0xff]  ;;  %v243_v35 = vld [vmem:[%s722_s8 + $0xb0] sm:$0xff] }
  0x26   : > { %v315_v30 = vadd.f32 %v733_v2, %v276_v19  ;;  %v316_v31 = vadd.f32 %v733_v2, %v277_v21  ;;  %v280_v34 = vmul.f32 %v717_v0, %v241_v22  ;;  %v244_v36 = vld [vmem:[%s722_s8 + $0xb8] sm:$0xff]  ;;  %409 = vst.msk [vmem:[%s771_s20 + $0x68] sm:$0xff] %vm395_vm0, %v376_v23  ;;  %v377_v37 = vadd.f32 %v345_v12, %v313_v24  ;;  %v351_v40 = vld [vmem:[%s727_s11 + $0xa0] sm:$0xff]  ;;  %v246_v43 = vld [vmem:[%s722_s8 + $0xc8] sm:$0xff] }
  0x27   : > { %v378_v38 = vadd.f32 %v346_v18, %v314_v25  ;;  %v317_v39 = vadd.f32 %v733_v2, %v278_v27  ;;  %v281_v41 = vmul.f32 %v717_v0, %v242_v29  ;;  %v245_v42 = vld [vmem:[%s722_s8 + $0xc0] sm:$0xff]  ;;  %v318_v46 = vadd.f32 %v733_v2, %v279_v32  ;;  %v352_v48 = vld [vmem:[%s727_s11 + $0xa8] sm:$0xff]  ;;  %v247_v49 = vld [vmem:[%s722_s8 + $0xd0] sm:$0xff] }
  0x28   : > { %v379_v44 = vadd.f32 %v347_v20, %v315_v30  ;;  %v380_v45 = vadd.f32 %v348_v26, %v316_v31  ;;  %v319_v47 = vadd.f32 %v733_v2, %v280_v34  ;;  %410 = vst.msk [vmem:[%s771_s20 + $0x70] sm:$0xff] %vm395_vm0, %v377_v37  ;;  %v282_v52 = vmul.f32 %v717_v0, %v243_v35  ;;  %v248_v54 = vld [vmem:[%s722_s8 + $0xd8] sm:$0xff]  ;;  %v249_v55 = vld [vmem:[%s722_s8 + $0xe0] sm:$0xff]  ;;  %v353_v58 = vld [vmem:[%s727_s11 + $0xb0] sm:$0xff] }
  0x29   : > { %411 = vst.msk [vmem:[%s771_s20 + $0x78] sm:$0xff] %vm395_vm0, %v378_v38  ;;  %v381_v50 = vadd.f32 %v349_v28, %v317_v39  ;;  %v320_v51 = vadd.f32 %v733_v2, %v281_v41  ;;  %v283_v53 = vmul.f32 %v717_v0, %v244_v36  ;;  %v382_v56 = vadd.f32 %v350_v33, %v318_v46  ;;  %v354_v59 = vld [vmem:[%s727_s11 + $0xb8] sm:$0xff]  ;;  %v250_v62 = vld [vmem:[%s722_s8 + $0xe8] sm:$0xff]  ;;  %v355_v4 = vld [vmem:[%s727_s11 + $0xc0] sm:$0xff] }
  0x2a   : > { %412 = vst.msk [vmem:[%s771_s20 + $0x80] sm:$0xff] %vm395_vm0, %v379_v44  ;;  %413 = vst.msk [vmem:[%s771_s20 + $0x88] sm:$0xff] %vm395_vm0, %v380_v45  ;;  %v383_v57 = vadd.f32 %v351_v40, %v319_v47  ;;  %v284_v60 = vmul.f32 %v717_v0, %v245_v42  ;;  %v285_v61 = vmul.f32 %v717_v0, %v246_v43  ;;  %v356_v5 = vld [vmem:[%s727_s11 + $0xc8] sm:$0xff]  ;;  %v357_v9 = vld [vmem:[%s727_s11 + $0xd0] sm:$0xff] }
  0x2b   : > { %414 = vst.msk [vmem:[%s771_s20 + $0x90] sm:$0xff] %vm395_vm0, %v381_v50  ;;  %v384_v63 = vadd.f32 %v352_v48, %v320_v51  ;;  %v321_v1 = vadd.f32 %v733_v2, %v282_v52  ;;  %v322_v3 = vadd.f32 %v733_v2, %v283_v53  ;;  %v286_v6 = vmul.f32 %v717_v0, %v247_v49  ;;  %v251_v12 = vld [vmem:[%s722_s8 + $0xf0] sm:$0xff]  ;;  %v252_v13 = vld [vmem:[%s722_s8 + $0xf8] sm:$0xff]  ;;  %v359_v18 = vld [vmem:[%s727_s11 + $0xe0] sm:$0xff]  ;;  %s580_s8 = scalar_lea.vmem %s579_s7, 8192 }
  0x2c   : > { %415 = vst.msk [vmem:[%s771_s20 + $0x98] sm:$0xff] %vm395_vm0, %v382_v56  ;;  %416 = vst.msk [vmem:[%s771_s20 + $0xa0] sm:$0xff] %vm395_vm0, %v383_v57  ;;  %v323_v7 = vadd.f32 %v733_v2, %v284_v60  ;;  %v324_v8 = vadd.f32 %v733_v2, %v285_v61  ;;  %v287_v10 = vmul.f32 %v717_v0, %v248_v54  ;;  %v358_v17 = vld [vmem:[%s727_s11 + $0xd8] sm:$0xff]  ;;  %v360_v24 = vld [vmem:[%s727_s11 + $0xe8] sm:$0xff]  ;;  %p582_p1 = scmp.lt.s32.totalorder %s580_s8, %s574_s5 }
  0x2d   : > { %v288_v11 = vmul.f32 %v717_v0, %v249_v55  ;;  %417 = vst.msk [vmem:[%s771_s20 + $0xa8] sm:$0xff] %vm395_vm0, %v384_v63  ;;  %v385_v14 = vadd.f32 %v353_v58, %v321_v1  ;;  %v386_v15 = vadd.f32 %v354_v59, %v322_v3  ;;  %v325_v16 = vadd.f32 %v733_v2, %v286_v6  ;;  %v361_v31 = vld [vmem:[%s727_s11 + $0xf0] sm:$0xff]  ;;  %v362_v32 = vld [vmem:[%s727_s11 + $0xf8] sm:$0xff] }
  0x2e   : > { %v289_v19 = vmul.f32 %v717_v0, %v250_v62  ;;  %v387_v20 = vadd.f32 %v355_v4, %v323_v7  ;;  %v388_v21 = vadd.f32 %v356_v5, %v324_v8  ;;  %v326_v22 = vadd.f32 %v733_v2, %v287_v10  ;;  %p583_p2 = por %p582_p1, %p581_p0 }
  0x2f   : > { %v327_v23 = vadd.f32 %v733_v2, %v288_v11  ;;  %418 = vst.msk [vmem:[%s771_s20 + $0xb0] sm:$0xff] %vm395_vm0, %v385_v14  ;;  %419 = vst.msk [vmem:[%s771_s20 + $0xb8] sm:$0xff] %vm395_vm0, %v386_v15  ;;  %v389_v25 = vadd.f32 %v357_v9, %v325_v16  ;;  %v290_v27 = vmul.f32 %v717_v0, %v251_v12 }
  0x30   : > { %v328_v26 = vadd.f32 %v733_v2, %v289_v19  ;;  %v291_v28 = vmul.f32 %v717_v0, %v252_v13  ;;  %420 = vst.msk [vmem:[%s771_s20 + $0xc0] sm:$0xff] %vm395_vm0, %v387_v20  ;;  %421 = vst.msk [vmem:[%s771_s20 + $0xc8] sm:$0xff] %vm395_vm0, %v388_v21  ;;  %v390_v29 = vadd.f32 %v358_v17, %v326_v22  ;;  %p584_p3 = pnand %p583_p2, %p577_p13 }
  0x31   : > { %v391_v30 = vadd.f32 %v359_v18, %v327_v23  ;;  %422 = vst.msk [vmem:[%s771_s20 + $0xd0] sm:$0xff] %vm395_vm0, %v389_v25  ;;  %v329_v0 = vadd.f32 %v733_v2, %v290_v27 }
  0x32   : > { %v392_v33 = vadd.f32 %v360_v24, %v328_v26  ;;  %v330_v34 = vadd.f32 %v733_v2, %v291_v28  ;;  %423 = vst.msk [vmem:[%s771_s20 + $0xd8] sm:$0xff] %vm395_vm0, %v390_v29 }
  0x33   : > { %424 = vst.msk [vmem:[%s771_s20 + $0xe0] sm:$0xff] %vm395_vm0, %v391_v30  ;;  %v393_v35 = vadd.f32 %v361_v31, %v329_v0 }
  0x34   : > { %425 = vst.msk [vmem:[%s771_s20 + $0xe8] sm:$0xff] %vm395_vm0, %v392_v33  ;;  %v394_v36 = vadd.f32 %v362_v32, %v330_v34 }
  0x35   : > { %426 = vst.msk [vmem:[%s771_s20 + $0xf0] sm:$0xff] %vm395_vm0, %v393_v35 }
  0x36   : > { %427 = vst.msk [vmem:[%s771_s20 + $0xf8] sm:$0xff] %vm395_vm0, %v394_v36 }
  0x37   : > { %587 = shalt.err (!%p584_p3)
}
  0x38   : > { %s588_s28 = scalar_lea.hbm %s932_s29, 4096  ;;  %s592_s11 = scalar_lea.hbm %s988_s4, 8192 }
  0x39   : > { %p589_p4 = scmp.ne.s32.totalorder %s932_s29, %s588_s28  ;;  %p593_p9 = scmp.lt.s32.totalorder %s932_s29, %s988_s4 }
  0x3a   : > { %p594_p10 = scmp.lt.s32.totalorder %s592_s11, %s588_s28 }
  0x3b   : > { %p590_p7 = pnand %p589_p4, %p702_p5 }
  0x3c   : > { %p595_p11 = por %p594_p10, %p593_p9 }
  0x3d   : > { %p591_p8 = pneg %p590_p7 }
  0x3f   : > { %p596_p12 = pnand %p595_p11, %p591_p8 }
  0x41   : > { %599 = shalt.err (!%p596_p12)
}
  0x42   : > { %s637_s14 = smov 128   ;;  %s638_s20 = smov 8  }
  0x43   : > { %533 = dma.vmem_to_hbm [thread:$0]  (%p702_p5), %s934_s23, 4096, %s932_s29, %s944_s30, %s637_s14, %s637_s14, %s638_s20  }
  0x44 PF: > { %p539_p13 = scmp.ge.s32.totalorder %s634_s18, 2  ;;  %s457_s22 = sand.u32 1, %s622_s15  }
  0x45   : > { %s458_s19 = scalar_lea.sflag [#allocation3], %s457_s22 }
  0x46   : > { %p536_p0 = pnand %p539_p13, %p706_p6 }
  0x48   : > { %p537_p1 = pneg %p536_p0 }
  0x4a   : > { %617 = dma.done.wait (%p537_p1), %s458_s19, 4096  }
  0x4b   : > { %619 = vsyncadd (%p537_p1), %s458_s19, 4294963200  ;;  %p14_p2 = scmp.ge.s32.totalorder %s689_s21, 4   ;;  %s991_s15 = smov %s626_s16 }
  0x4c   : > { %s992_s16 = smov %s630_s17  ;;  %s993_s17 = smov %s700_s24 }
  0x4d   : > { %s994_s18 = smov %s689_s21  ;;  %16 = sbr.rel (!%p14_p2) target bundleno = 3 (0x3), region = 74 }
  0x52   :  { %463 = vsyncpa [#allocation3], 1 }
  0x53   :  { %465 = vsyncpa [#allocation3 + $0x1], 1 }

</bundles_post_ra>
